<compile_context>
chip_gen: v5e
topology: v5e:2x2
jax: 0.10.0
libtpu: 0.0.40
codegen_flags: <defaults>
</compile_context>

<pallas_src>
import functools

import jax
import jax.numpy as jnp
from jax.experimental import pallas as pl
from jax.experimental.pallas import tpu as pltpu

LANE = 128


def _round_up(v, m):
    return (v + m - 1) // m * m


def _pad2d(a, rows, cols):
    r, c = a.shape
    return jnp.pad(a, ((0, rows - r), (0, cols - c)))


def _full_spec(shape):
    return pl.BlockSpec(shape, lambda: (0,) * len(shape))


# ---------------------------------------------------------------- kernels ---

def fused_layer_kernel(adj_ref, x_ref, w1_ref, b1_ref, w2_ref, b2_ref,
                       gamma_ref, beta_ref, mask_ref, pmat_ref,
                       h_out_ref, pooled_out_ref, acc_ref,
                       *, n_real, apply_bn):
    """One GIN layer: (A+I)@x (tiled over k), MLP, [ReLU+BN], mask, pool."""
    k = pl.program_id(0)

    @pl.when(k == 0)
    def _():
        acc_ref[...] = jnp.zeros_like(acc_ref)

    # Accumulate the aggregation matmul over reduction (column) stripes.
    # bf16 operands, f32 accumulation on the MXU.
    acc_ref[...] += jnp.dot(adj_ref[...], x_ref[...],
                            preferred_element_type=jnp.float32)

    @pl.when(k == pl.num_programs(0) - 1)
    def _():
        agg = acc_ref[...]                                   # f32 (Np, Fp)
        mask = mask_ref[...]                                 # f32 (Np, 1)

        # GIN MLP: Linear -> ReLU -> Linear
        h = jnp.dot(agg.astype(jnp.bfloat16), w1_ref[...],
                    preferred_element_type=jnp.float32) + b1_ref[...]
        h = jnp.maximum(h, 0.0)
        h = jnp.dot(h.astype(jnp.bfloat16), w2_ref[...],
                    preferred_element_type=jnp.float32) + b2_ref[...]

        if apply_bn:
            # outer ReLU then BatchNorm1d (training: batch stats, biased var)
            h = jnp.maximum(h, 0.0)
            hm = h * mask
            mean = jnp.sum(hm, axis=0, keepdims=True) / n_real
            diff = h - mean
            var = jnp.sum(diff * diff * mask, axis=0, keepdims=True) / n_real
            inv = jax.lax.rsqrt(var + 1e-5)
            h = diff * inv * gamma_ref[...] + beta_ref[...]

        h = h * mask                                         # zero padded rows
        h_out_ref[...] = h.astype(h_out_ref.dtype)
        # pooled epilogue: mean-pool matrix (G, Np) @ h (Np, Hp)
        pooled_out_ref[...] = jnp.dot(pmat_ref[...], h,
                                      preferred_element_type=jnp.float32)


def proj_head_kernel(x_ref, w1_ref, b1_ref, w2_ref, b2_ref, out_ref):
    h = jnp.dot(x_ref[...], w1_ref[...],
                preferred_element_type=jnp.float32) + b1_ref[...]
    h = jnp.maximum(h, 0.0)
    out_ref[...] = jnp.dot(h.astype(w2_ref.dtype), w2_ref[...],
                           preferred_element_type=jnp.float32) + b2_ref[...]


# ---------------------------------------------------------------- wrappers ---

def fused_gin_layer(adj, x, w1, b1, w2, b2, gamma, beta, mask, pmat,
                    *, n_real, apply_bn, tk):
    Np = adj.shape[0]
    Fp = x.shape[1]
    Hp = w1.shape[1]
    G = pmat.shape[0]
    nk = Np // tk

    kernel = functools.partial(fused_layer_kernel,
                               n_real=float(n_real), apply_bn=apply_bn)

    flops = (2 * Np * Np * Fp + 2 * Np * Fp * Hp + 2 * Np * Hp * Hp
             + 2 * G * Np * Hp)
    bytes_accessed = (Np * Np * 2 + Np * Fp * 2 + Fp * Hp * 2 + Hp * Hp * 2
                      + G * Np * 4 + Np * 4 + 6 * Hp * 4
                      + Np * Hp * 2 + G * Hp * 4)
    cost = pl.CostEstimate(flops=int(flops), transcendentals=int(Hp),
                           bytes_accessed=int(bytes_accessed))

    # VMEM footprint: double-buffered adj/x stripes + resident weights,
    # outputs and the f32 accumulator scratch.
    vmem_est = (2 * Np * tk * 2 + 2 * tk * Fp * 2
                + Fp * Hp * 2 + Hp * Hp * 2 + 8 * Hp * 4
                + Np * 4 + G * Np * 4
                + 2 * Np * Hp * 2 + 2 * G * Hp * 4
                + Np * Fp * 4)
    vmem_limit = int(min(max(2 * vmem_est, 16 * 1024 * 1024),
                         48 * 1024 * 1024))

    h, pooled = pl.pallas_call(
        kernel,
        out_shape=(jax.ShapeDtypeStruct((Np, Hp), jnp.bfloat16),
                   jax.ShapeDtypeStruct((G, Hp), jnp.float32)),
        grid_spec=pltpu.PrefetchScalarGridSpec(
            num_scalar_prefetch=0,
            grid=(nk,),
            in_specs=[
                pl.BlockSpec((Np, tk), lambda k: (0, k)),    # adjacency stripe
                pl.BlockSpec((tk, Fp), lambda k: (k, 0)),    # x stripe
                pl.BlockSpec((Fp, Hp), lambda k: (0, 0)),    # W1 (resident)
                pl.BlockSpec((1, Hp), lambda k: (0, 0)),     # b1
                pl.BlockSpec((Hp, Hp), lambda k: (0, 0)),    # W2
                pl.BlockSpec((1, Hp), lambda k: (0, 0)),     # b2
                pl.BlockSpec((1, Hp), lambda k: (0, 0)),     # gamma
                pl.BlockSpec((1, Hp), lambda k: (0, 0)),     # beta
                pl.BlockSpec((Np, 1), lambda k: (0, 0)),     # node mask
                pl.BlockSpec((G, Np), lambda k: (0, 0)),     # mean-pool matrix
            ],
            out_specs=[
                pl.BlockSpec((Np, Hp), lambda k: (0, 0)),    # h (next layer)
                pl.BlockSpec((G, Hp), lambda k: (0, 0)),     # pooled
            ],
            scratch_shapes=[pltpu.VMEM((Np, Fp), jnp.float32)],
        ),
        compiler_params=pltpu.CompilerParams(
            dimension_semantics=("arbitrary",),
            vmem_limit_bytes=vmem_limit),
        cost_estimate=cost,
    )(adj, x, w1, b1, w2, b2, gamma, beta, mask, pmat)
    return h, pooled


def proj_head(x, w1, b1, w2, b2):
    G = x.shape[0]
    Eout = w1.shape[1]
    return pl.pallas_call(
        proj_head_kernel,
        out_shape=jax.ShapeDtypeStruct((G, Eout), jnp.float32),
        in_specs=[_full_spec(x.shape), _full_spec(w1.shape),
                  _full_spec(b1.shape), _full_spec(w2.shape),
                  _full_spec(b2.shape)],
        out_specs=_full_spec((G, Eout)),
    )(x, w1, b1, w2, b2)


def net_forward(params, x, edge_index, batch, num_graphs):
    """Forward pass of Net (GIN encoder + projection head)."""
    N, F = x.shape
    convs = params["convs"]
    bns = params["bns"]
    nconvs = len(convs)
    H = convs[0][2].shape[1]

    # padded, lane-dense sizes
    Np = _round_up(max(N, 8), LANE)
    tk = 512 if Np % 512 == 0 else (256 if Np % 256 == 0 else 128)
    Fp = _round_up(F, LANE)
    Hp = _round_up(H, LANE)

    src, dst = edge_index[0], edge_index[1]
    # A_hat = A + I  (A[dst, src] += 1; identity carries the (1+eps)*x term,
    # eps=0). Small-integer entries -> exact in bf16.
    adj = jnp.zeros((Np, Np), jnp.float32)
    adj = adj.at[dst, src].add(1.0)
    adj = adj.at[jnp.arange(N), jnp.arange(N)].add(1.0)
    adj = adj.astype(jnp.bfloat16)

    # mean-pool matrix P[g, n] = 1/|V_g| if batch[n] == g, zero on padding
    onehot = (jnp.arange(num_graphs)[:, None] == batch[None, :]).astype(jnp.float32)
    counts = jnp.maximum(onehot.sum(axis=1, keepdims=True), 1.0)
    pmat = _pad2d(onehot / counts, num_graphs, Np)

    mask = jnp.zeros((Np, 1), jnp.float32).at[:N].set(1.0)

    h = _pad2d(x.astype(jnp.float32), Np, Fp).astype(jnp.bfloat16)

    pooled_list = []
    for i in range(nconvs):
        w1, b1, w2, b2 = convs[i]
        gamma, beta = bns[i]
        in_p = Fp if i == 0 else Hp
        h, pooled = fused_gin_layer(
            adj, h,
            _pad2d(w1, in_p, Hp).astype(jnp.bfloat16), _pad2d(b1, 1, Hp),
            _pad2d(w2, Hp, Hp).astype(jnp.bfloat16), _pad2d(b2, 1, Hp),
            _pad2d(gamma, 1, Hp), _pad2d(beta, 1, Hp),
            mask, pmat,
            n_real=N, apply_bn=(i < nconvs - 1), tk=tk)
        pooled_list.append(pooled)

    # concat pooled layer outputs in padded feature space (G, nconvs*Hp)
    y_pad = jnp.concatenate(pooled_list, axis=1)

    # projection head on the padded layout; real feature j of layer l sits at
    # column l*Hp + j, so scatter the original proj weights accordingly.
    E = H * nconvs
    Ep_in = nconvs * Hp
    Ep_out = _round_up(E, LANE)
    pw1, pb1, pw2, pb2 = params["proj"]
    row_idx = (jnp.arange(E) // H) * Hp + (jnp.arange(E) % H)
    W1p = jnp.zeros((Ep_in, Ep_out), jnp.float32).at[row_idx, :E].set(pw1)
    b1p = _pad2d(pb1, 1, Ep_out)
    W2p = jnp.zeros((Ep_out, Ep_out), jnp.float32).at[:E, :E].set(pw2)
    b2p = _pad2d(pb2, 1, Ep_out)

    y = proj_head(y_pad.astype(jnp.bfloat16),
                  W1p.astype(jnp.bfloat16), b1p,
                  W2p.astype(jnp.bfloat16), b2p)
    return y[:, :E]


# -------------------------------------------------------------- init utils ---

def xavier_uniform(key, fan_in, fan_out):
    bound = (6.0 / (fan_in + fan_out)) ** 0.5
    return jax.random.uniform(key, (fan_in, fan_out), jnp.float32, -bound, bound)


def init_params(key, input_dim, hidden_dim, nconvs):
    convs, bns = [], []
    for i in range(nconvs):
        in_dim = input_dim if i == 0 else hidden_dim
        key, k1, k2 = jax.random.split(key, 3)
        w1 = xavier_uniform(k1, in_dim, hidden_dim)
        b1 = jnp.zeros((1, hidden_dim), jnp.float32)
        w2 = xavier_uniform(k2, hidden_dim, hidden_dim)
        b2 = jnp.zeros((1, hidden_dim), jnp.float32)
        convs.append((w1, b1, w2, b2))
        bns.append((jnp.ones((1, hidden_dim), jnp.float32),
                    jnp.zeros((1, hidden_dim), jnp.float32)))
    emb = hidden_dim * nconvs
    key, k1, k2 = jax.random.split(key, 3)
    proj = (xavier_uniform(k1, emb, emb), jnp.zeros((1, emb), jnp.float32),
            xavier_uniform(k2, emb, emb), jnp.zeros((1, emb), jnp.float32))
    return {"convs": convs, "bns": bns, "proj": proj}


# -------------------------------------------------------------------- main ---

if __name__ == "__main__":
    key = jax.random.PRNGKey(0)

    # small synthetic graph batch: 2 graphs x 6 nodes, bidirectional ring each
    N, num_graphs = 12, 2
    input_dim, hidden_dim, output_dim, nconvs = 8, 16, 16, 5

    key, kx, kp = jax.random.split(key, 3)
    x = jax.random.normal(kx, (N, input_dim), jnp.float32)

    src, dst = [], []
    for g in range(num_graphs):
        base = g * 6
        for i in range(6):
            a, b = base + i, base + (i + 1) % 6
            src += [a, b]
            dst += [b, a]
    edge_index = jnp.array([src, dst], dtype=jnp.int32)       # (2, 24)
    batch = jnp.array([0] * 6 + [1] * 6, dtype=jnp.int32)     # (12,)

    params = init_params(kp, input_dim, hidden_dim, nconvs)

    fwd = jax.jit(net_forward, static_argnums=(4,))
    y = fwd(params, x, edge_index, batch, num_graphs)
    y = jax.block_until_ready(y)
    assert y.shape == (num_graphs, hidden_dim * nconvs)
    print("KERNEL_OK")
</pallas_src>

<mosaic_0001>
module attributes {stable_mosaic.version = 11 : i64} {
  func.func @fused_layer_kernel(%arg0: i32, %arg1: memref<128x128xbf16, #tpu.memory_space<vmem>>, %arg2: memref<128x128xbf16, #tpu.memory_space<vmem>>, %arg3: memref<128x128xbf16, #tpu.memory_space<vmem>>, %arg4: memref<1x128xf32, #tpu.memory_space<vmem>>, %arg5: memref<128x128xbf16, #tpu.memory_space<vmem>>, %arg6: memref<1x128xf32, #tpu.memory_space<vmem>>, %arg7: memref<1x128xf32, #tpu.memory_space<vmem>>, %arg8: memref<1x128xf32, #tpu.memory_space<vmem>>, %arg9: memref<128x1xf32, #tpu.memory_space<vmem>>, %arg10: memref<2x128xf32, #tpu.memory_space<vmem>>, %arg11: memref<128x128xbf16, #tpu.memory_space<vmem>>, %arg12: memref<2x128xf32, #tpu.memory_space<vmem>>, %arg13: memref<128x128xf32, #tpu.memory_space<vmem>>) attributes {dimension_semantics = [#tpu.dimension_semantics<arbitrary>], iteration_bounds = array<i64: 1>, scalar_prefetch = 0 : i64, scratch_operands = 1 : i64, tpu.core_type = #tpu.core_type<tc>, window_params = [{transform_indices = @transform_0, window_bounds = array<i64: 128, 128>}, {transform_indices = @transform_1, window_bounds = array<i64: 128, 128>}, {pipeline_mode = #tpu.pipeline_mode<synchronous>, transform_indices = @transform_2, window_bounds = array<i64: 128, 128>}, {pipeline_mode = #tpu.pipeline_mode<synchronous>, transform_indices = @transform_3, window_bounds = array<i64: 1, 128>}, {pipeline_mode = #tpu.pipeline_mode<synchronous>, transform_indices = @transform_4, window_bounds = array<i64: 128, 128>}, {pipeline_mode = #tpu.pipeline_mode<synchronous>, transform_indices = @transform_5, window_bounds = array<i64: 1, 128>}, {pipeline_mode = #tpu.pipeline_mode<synchronous>, transform_indices = @transform_6, window_bounds = array<i64: 1, 128>}, {pipeline_mode = #tpu.pipeline_mode<synchronous>, transform_indices = @transform_7, window_bounds = array<i64: 1, 128>}, {pipeline_mode = #tpu.pipeline_mode<synchronous>, transform_indices = @transform_8, window_bounds = array<i64: 128, 1>}, {pipeline_mode = #tpu.pipeline_mode<synchronous>, transform_indices = @transform_9, window_bounds = array<i64: 2, 128>}, {pipeline_mode = #tpu.pipeline_mode<synchronous>, transform_indices = @transform_10, window_bounds = array<i64: 128, 128>}, {pipeline_mode = #tpu.pipeline_mode<synchronous>, transform_indices = @transform_11, window_bounds = array<i64: 2, 128>}]} {
    %c0_i32 = arith.constant 0 : i32
    %0 = arith.cmpi eq, %arg0, %c0_i32 : i32
    %1 = arith.extui %0 : i1 to i32
    %c0_i32_0 = arith.constant 0 : i32
    %2 = arith.cmpi ne, %1, %c0_i32_0 : i32
    scf.if %2 {
      %cst_10 = arith.constant 0.000000e+00 : f32
      %12 = vector.broadcast %cst_10 : f32 to vector<128x128xf32>
      %c0_11 = arith.constant 0 : index
      %c0_12 = arith.constant 0 : index
      %13 = vector.load %arg13[%c0_11, %c0_12] : memref<128x128xf32, #tpu.memory_space<vmem>>, vector<128x128xf32>
      tpu.vector_store %arg13[%c0_11, %c0_12], %12 {strides = array<i32>} : memref<128x128xf32, #tpu.memory_space<vmem>>, vector<128x128xf32>,
    } else {
    }
    %c0 = arith.constant 0 : index
    %c0_1 = arith.constant 0 : index
    %3 = vector.load %arg13[%c0, %c0_1] : memref<128x128xf32, #tpu.memory_space<vmem>>, vector<128x128xf32>
    %c0_2 = arith.constant 0 : index
    %c0_3 = arith.constant 0 : index
    %4 = vector.load %arg1[%c0_2, %c0_3] : memref<128x128xbf16, #tpu.memory_space<vmem>>, vector<128x128xbf16>
    %c0_4 = arith.constant 0 : index
    %c0_5 = arith.constant 0 : index
    %5 = vector.load %arg2[%c0_4, %c0_5] : memref<128x128xbf16, #tpu.memory_space<vmem>>, vector<128x128xbf16>
    %cst = arith.constant dense<0.000000e+00> : vector<128x128xf32>
    %6 = tpu.matmul %4, %5, %cst {dimension_numbers = #tpu.dot_dimension_numbers<[1], [0], [0], [1], [0, 0, 1, 1], [], []>} : vector<128x128xbf16>, vector<128x128xbf16>, vector<128x128xf32> -> vector<128x128xf32>
    %7 = arith.addf %3, %6 : vector<128x128xf32>
    %c0_6 = arith.constant 0 : index
    %c0_7 = arith.constant 0 : index
    %8 = vector.load %arg13[%c0_6, %c0_7] : memref<128x128xf32, #tpu.memory_space<vmem>>, vector<128x128xf32>
    tpu.vector_store %arg13[%c0_6, %c0_7], %7 {strides = array<i32>} : memref<128x128xf32, #tpu.memory_space<vmem>>, vector<128x128xf32>,
    %c0_i32_8 = arith.constant 0 : i32
    %9 = arith.cmpi eq, %arg0, %c0_i32_8 : i32
    %10 = arith.extui %9 : i1 to i32
    %c0_i32_9 = arith.constant 0 : i32
    %11 = arith.cmpi ne, %10, %c0_i32_9 : i32
    scf.if %11 {
      %c0_10 = arith.constant 0 : index
      %c0_11 = arith.constant 0 : index
      %12 = vector.load %arg13[%c0_10, %c0_11] : memref<128x128xf32, #tpu.memory_space<vmem>>, vector<128x128xf32>
      %c0_12 = arith.constant 0 : index
      %c0_13 = arith.constant 0 : index
      %13 = vector.load %arg9[%c0_12, %c0_13] : memref<128x1xf32, #tpu.memory_space<vmem>>, vector<128x1xf32>
      %14 = arith.truncf %12 : vector<128x128xf32> to vector<128x128xbf16>
      %c0_14 = arith.constant 0 : index
      %c0_15 = arith.constant 0 : index
      %15 = vector.load %arg3[%c0_14, %c0_15] : memref<128x128xbf16, #tpu.memory_space<vmem>>, vector<128x128xbf16>
      %cst_16 = arith.constant dense<0.000000e+00> : vector<128x128xf32>
      %16 = tpu.matmul %14, %15, %cst_16 {dimension_numbers = #tpu.dot_dimension_numbers<[1], [0], [0], [1], [0, 0, 1, 1], [], []>} : vector<128x128xbf16>, vector<128x128xbf16>, vector<128x128xf32> -> vector<128x128xf32>
      %c0_17 = arith.constant 0 : index
      %c0_18 = arith.constant 0 : index
      %17 = vector.load %arg4[%c0_17, %c0_18] : memref<1x128xf32, #tpu.memory_space<vmem>>, vector<1x128xf32>
      %18 = vector.broadcast %17 : vector<1x128xf32> to vector<128x128xf32>
      %19 = arith.addf %16, %18 : vector<128x128xf32>
      %cst_19 = arith.constant 0.000000e+00 : f32
      %20 = vector.broadcast %cst_19 : f32 to vector<128x128xf32>
      %21 = arith.maximumf %19, %20 : vector<128x128xf32>
      %22 = arith.truncf %21 : vector<128x128xf32> to vector<128x128xbf16>
      %c0_20 = arith.constant 0 : index
      %c0_21 = arith.constant 0 : index
      %23 = vector.load %arg5[%c0_20, %c0_21] : memref<128x128xbf16, #tpu.memory_space<vmem>>, vector<128x128xbf16>
      %cst_22 = arith.constant dense<0.000000e+00> : vector<128x128xf32>
      %24 = tpu.matmul %22, %23, %cst_22 {dimension_numbers = #tpu.dot_dimension_numbers<[1], [0], [0], [1], [0, 0, 1, 1], [], []>} : vector<128x128xbf16>, vector<128x128xbf16>, vector<128x128xf32> -> vector<128x128xf32>
      %c0_23 = arith.constant 0 : index
      %c0_24 = arith.constant 0 : index
      %25 = vector.load %arg6[%c0_23, %c0_24] : memref<1x128xf32, #tpu.memory_space<vmem>>, vector<1x128xf32>
      %26 = vector.broadcast %25 : vector<1x128xf32> to vector<128x128xf32>
      %27 = arith.addf %24, %26 : vector<128x128xf32>
      %cst_25 = arith.constant 0.000000e+00 : f32
      %28 = vector.broadcast %cst_25 : f32 to vector<128x128xf32>
      %29 = arith.maximumf %27, %28 : vector<128x128xf32>
      %30 = vector.broadcast %13 : vector<128x1xf32> to vector<128x128xf32>
      %31 = arith.mulf %29, %30 : vector<128x128xf32>
      %cst_26 = arith.constant dense<0.000000e+00> : vector<128xf32>
      %32 = vector.multi_reduction <add>, %31, %cst_26 [0] : vector<128x128xf32> to vector<128xf32>
      %33 = vector.shape_cast %32 : vector<128xf32> to vector<1x128xf32>
      %cst_27 = arith.constant 1.200000e+01 : f32
      %34 = vector.broadcast %cst_27 : f32 to vector<1x128xf32>
      %35 = arith.divf %33, %34 : vector<1x128xf32>
      %36 = vector.broadcast %35 : vector<1x128xf32> to vector<128x128xf32>
      %37 = arith.subf %29, %36 : vector<128x128xf32>
      %38 = arith.mulf %37, %37 : vector<128x128xf32>
      %39 = vector.broadcast %13 : vector<128x1xf32> to vector<128x128xf32>
      %40 = arith.mulf %38, %39 : vector<128x128xf32>
      %cst_28 = arith.constant dense<0.000000e+00> : vector<128xf32>
      %41 = vector.multi_reduction <add>, %40, %cst_28 [0] : vector<128x128xf32> to vector<128xf32>
      %42 = vector.shape_cast %41 : vector<128xf32> to vector<1x128xf32>
      %cst_29 = arith.constant 1.200000e+01 : f32
      %43 = vector.broadcast %cst_29 : f32 to vector<1x128xf32>
      %44 = arith.divf %42, %43 : vector<1x128xf32>
      %cst_30 = arith.constant 9.99999974E-6 : f32
      %45 = vector.broadcast %cst_30 : f32 to vector<1x128xf32>
      %46 = arith.addf %44, %45 : vector<1x128xf32>
      %47 = math.rsqrt %46 : vector<1x128xf32>
      %48 = vector.broadcast %47 : vector<1x128xf32> to vector<128x128xf32>
      %49 = arith.mulf %37, %48 : vector<128x128xf32>
      %c0_31 = arith.constant 0 : index
      %c0_32 = arith.constant 0 : index
      %50 = vector.load %arg7[%c0_31, %c0_32] : memref<1x128xf32, #tpu.memory_space<vmem>>, vector<1x128xf32>
      %51 = vector.broadcast %50 : vector<1x128xf32> to vector<128x128xf32>
      %52 = arith.mulf %49, %51 : vector<128x128xf32>
      %c0_33 = arith.constant 0 : index
      %c0_34 = arith.constant 0 : index
      %53 = vector.load %arg8[%c0_33, %c0_34] : memref<1x128xf32, #tpu.memory_space<vmem>>, vector<1x128xf32>
      %54 = vector.broadcast %53 : vector<1x128xf32> to vector<128x128xf32>
      %55 = arith.addf %52, %54 : vector<128x128xf32>
      %56 = vector.broadcast %13 : vector<128x1xf32> to vector<128x128xf32>
      %57 = arith.mulf %55, %56 : vector<128x128xf32>
      %58 = arith.truncf %57 : vector<128x128xf32> to vector<128x128xbf16>
      %c0_35 = arith.constant 0 : index
      %c0_36 = arith.constant 0 : index
      %59 = vector.load %arg11[%c0_35, %c0_36] : memref<128x128xbf16, #tpu.memory_space<vmem>>, vector<128x128xbf16>
      tpu.vector_store %arg11[%c0_35, %c0_36], %58 {strides = array<i32>} : memref<128x128xbf16, #tpu.memory_space<vmem>>, vector<128x128xbf16>,
      %c0_37 = arith.constant 0 : index
      %c0_38 = arith.constant 0 : index
      %60 = vector.load %arg10[%c0_37, %c0_38] : memref<2x128xf32, #tpu.memory_space<vmem>>, vector<2x128xf32>
      %cst_39 = arith.constant dense<0.000000e+00> : vector<2x128xf32>
      %61 = tpu.matmul %60, %57, %cst_39 {dimension_numbers = #tpu.dot_dimension_numbers<[1], [0], [0], [1], [0, 0, 1, 1], [], []>} : vector<2x128xf32>, vector<128x128xf32>, vector<2x128xf32> -> vector<2x128xf32>
      %c0_40 = arith.constant 0 : index
      %c0_41 = arith.constant 0 : index
      %62 = vector.load %arg12[%c0_40, %c0_41] : memref<2x128xf32, #tpu.memory_space<vmem>>, vector<2x128xf32>
      tpu.vector_store %arg12[%c0_40, %c0_41], %61 {strides = array<i32>} : memref<2x128xf32, #tpu.memory_space<vmem>>, vector<2x128xf32>,
    } else {
    }
    return
  }
  func.func @transform_0(%arg0: i32) -> (i32, i32) {
    %c0_i32 = arith.constant 0 : i32
    %c0_i32_0 = arith.constant 0 : i32
    return %c0_i32, %arg0 : i32, i32
  }
  func.func @transform_1(%arg0: i32) -> (i32, i32) {
    %c0_i32 = arith.constant 0 : i32
    %c0_i32_0 = arith.constant 0 : i32
    return %arg0, %c0_i32 : i32, i32
  }
  func.func @transform_2(%arg0: i32) -> (i32, i32) {
    %c0_i32 = arith.constant 0 : i32
    %c0_i32_0 = arith.constant 0 : i32
    %c0_i32_1 = arith.constant 0 : i32
    return %c0_i32, %c0_i32_0 : i32, i32
  }
  func.func @transform_3(%arg0: i32) -> (i32, i32) {
    %c0_i32 = arith.constant 0 : i32
    %c0_i32_0 = arith.constant 0 : i32
    %c0_i32_1 = arith.constant 0 : i32
    return %c0_i32, %c0_i32_0 : i32, i32
  }
  func.func @transform_4(%arg0: i32) -> (i32, i32) {
    %c0_i32 = arith.constant 0 : i32
    %c0_i32_0 = arith.constant 0 : i32
    %c0_i32_1 = arith.constant 0 : i32
    return %c0_i32, %c0_i32_0 : i32, i32
  }
  func.func @transform_5(%arg0: i32) -> (i32, i32) {
    %c0_i32 = arith.constant 0 : i32
    %c0_i32_0 = arith.constant 0 : i32
    %c0_i32_1 = arith.constant 0 : i32
    return %c0_i32, %c0_i32_0 : i32, i32
  }
  func.func @transform_6(%arg0: i32) -> (i32, i32) {
    %c0_i32 = arith.constant 0 : i32
    %c0_i32_0 = arith.constant 0 : i32
    %c0_i32_1 = arith.constant 0 : i32
    return %c0_i32, %c0_i32_0 : i32, i32
  }
  func.func @transform_7(%arg0: i32) -> (i32, i32) {
    %c0_i32 = arith.constant 0 : i32
    %c0_i32_0 = arith.constant 0 : i32
    %c0_i32_1 = arith.constant 0 : i32
    return %c0_i32, %c0_i32_0 : i32, i32
  }
  func.func @transform_8(%arg0: i32) -> (i32, i32) {
    %c0_i32 = arith.constant 0 : i32
    %c0_i32_0 = arith.constant 0 : i32
    %c0_i32_1 = arith.constant 0 : i32
    return %c0_i32, %c0_i32_0 : i32, i32
  }
  func.func @transform_9(%arg0: i32) -> (i32, i32) {
    %c0_i32 = arith.constant 0 : i32
    %c0_i32_0 = arith.constant 0 : i32
    %c0_i32_1 = arith.constant 0 : i32
    return %c0_i32, %c0_i32_0 : i32, i32
  }
  func.func @transform_10(%arg0: i32) -> (i32, i32) {
    %c0_i32 = arith.constant 0 : i32
    %c0_i32_0 = arith.constant 0 : i32
    %c0_i32_1 = arith.constant 0 : i32
    return %c0_i32, %c0_i32_0 : i32, i32
  }
  func.func @transform_11(%arg0: i32) -> (i32, i32) {
    %c0_i32 = arith.constant 0 : i32
    %c0_i32_0 = arith.constant 0 : i32
    %c0_i32_1 = arith.constant 0 : i32
    return %c0_i32, %c0_i32_0 : i32, i32
  }
}

module attributes {stable_mosaic.version = 11 : i64} {
  func.func @fused_layer_kernel(%arg0: i32, %arg1: memref<128x128xbf16, #tpu.memory_space<vmem>>, %arg2: memref<128x128xbf16, #tpu.memory_space<vmem>>, %arg3: memref<128x128xbf16, #tpu.memory_space<vmem>>, %arg4: memref<1x128xf32, #tpu.memory_space<vmem>>, %arg5: memref<128x128xbf16, #tpu.memory_space<vmem>>, %arg6: memref<1x128xf32, #tpu.memory_space<vmem>>, %arg7: memref<1x128xf32, #tpu.memory_space<vmem>>, %arg8: memref<1x128xf32, #tpu.memory_space<vmem>>, %arg9: memref<128x1xf32, #tpu.memory_space<vmem>>, %arg10: memref<2x128xf32, #tpu.memory_space<vmem>>, %arg11: memref<128x128xbf16, #tpu.memory_space<vmem>>, %arg12: memref<2x128xf32, #tpu.memory_space<vmem>>, %arg13: memref<128x128xf32, #tpu.memory_space<vmem>>) attributes {dimension_semantics = [#tpu.dimension_semantics<arbitrary>], iteration_bounds = array<i64: 1>, scalar_prefetch = 0 : i64, scratch_operands = 1 : i64, tpu.core_type = #tpu.core_type<tc>, window_params = [{transform_indices = @transform_0, window_bounds = array<i64: 128, 128>}, {transform_indices = @transform_1, window_bounds = array<i64: 128, 128>}, {pipeline_mode = #tpu.pipeline_mode<synchronous>, transform_indices = @transform_2, window_bounds = array<i64: 128, 128>}, {pipeline_mode = #tpu.pipeline_mode<synchronous>, transform_indices = @transform_3, window_bounds = array<i64: 1, 128>}, {pipeline_mode = #tpu.pipeline_mode<synchronous>, transform_indices = @transform_4, window_bounds = array<i64: 128, 128>}, {pipeline_mode = #tpu.pipeline_mode<synchronous>, transform_indices = @transform_5, window_bounds = array<i64: 1, 128>}, {pipeline_mode = #tpu.pipeline_mode<synchronous>, transform_indices = @transform_6, window_bounds = array<i64: 1, 128>}, {pipeline_mode = #tpu.pipeline_mode<synchronous>, transform_indices = @transform_7, window_bounds = array<i64: 1, 128>}, {pipeline_mode = #tpu.pipeline_mode<synchronous>, transform_indices = @transform_8, window_bounds = array<i64: 128, 1>}, {pipeline_mode = #tpu.pipeline_mode<synchronous>, transform_indices = @transform_9, window_bounds = array<i64: 2, 128>}, {pipeline_mode = #tpu.pipeline_mode<synchronous>, transform_indices = @transform_10, window_bounds = array<i64: 128, 128>}, {pipeline_mode = #tpu.pipeline_mode<synchronous>, transform_indices = @transform_11, window_bounds = array<i64: 2, 128>}]} {
    %c0_i32 = arith.constant 0 : i32
    %0 = arith.cmpi eq, %arg0, %c0_i32 : i32
    %1 = arith.extui %0 : i1 to i32
    %c0_i32_0 = arith.constant 0 : i32
    %2 = arith.cmpi ne, %1, %c0_i32_0 : i32
    scf.if %2 {
      %cst_10 = arith.constant 0.000000e+00 : f32
      %12 = vector.broadcast %cst_10 : f32 to vector<128x128xf32>
      %c0_11 = arith.constant 0 : index
      %c0_12 = arith.constant 0 : index
      %13 = vector.load %arg13[%c0_11, %c0_12] : memref<128x128xf32, #tpu.memory_space<vmem>>, vector<128x128xf32>
      tpu.vector_store %arg13[%c0_11, %c0_12], %12 {strides = array<i32>} : memref<128x128xf32, #tpu.memory_space<vmem>>, vector<128x128xf32>,
    } else {
    }
    %c0 = arith.constant 0 : index
    %c0_1 = arith.constant 0 : index
    %3 = vector.load %arg13[%c0, %c0_1] : memref<128x128xf32, #tpu.memory_space<vmem>>, vector<128x128xf32>
    %c0_2 = arith.constant 0 : index
    %c0_3 = arith.constant 0 : index
    %4 = vector.load %arg1[%c0_2, %c0_3] : memref<128x128xbf16, #tpu.memory_space<vmem>>, vector<128x128xbf16>
    %c0_4 = arith.constant 0 : index
    %c0_5 = arith.constant 0 : index
    %5 = vector.load %arg2[%c0_4, %c0_5] : memref<128x128xbf16, #tpu.memory_space<vmem>>, vector<128x128xbf16>
    %cst = arith.constant dense<0.000000e+00> : vector<128x128xf32>
    %6 = tpu.matmul %4, %5, %cst {dimension_numbers = #tpu.dot_dimension_numbers<[1], [0], [0], [1], [0, 0, 1, 1], [], []>} : vector<128x128xbf16>, vector<128x128xbf16>, vector<128x128xf32> -> vector<128x128xf32>
    %7 = arith.addf %3, %6 : vector<128x128xf32>
    %c0_6 = arith.constant 0 : index
    %c0_7 = arith.constant 0 : index
    %8 = vector.load %arg13[%c0_6, %c0_7] : memref<128x128xf32, #tpu.memory_space<vmem>>, vector<128x128xf32>
    tpu.vector_store %arg13[%c0_6, %c0_7], %7 {strides = array<i32>} : memref<128x128xf32, #tpu.memory_space<vmem>>, vector<128x128xf32>,
    %c0_i32_8 = arith.constant 0 : i32
    %9 = arith.cmpi eq, %arg0, %c0_i32_8 : i32
    %10 = arith.extui %9 : i1 to i32
    %c0_i32_9 = arith.constant 0 : i32
    %11 = arith.cmpi ne, %10, %c0_i32_9 : i32
    scf.if %11 {
      %c0_10 = arith.constant 0 : index
      %c0_11 = arith.constant 0 : index
      %12 = vector.load %arg13[%c0_10, %c0_11] : memref<128x128xf32, #tpu.memory_space<vmem>>, vector<128x128xf32>
      %c0_12 = arith.constant 0 : index
      %c0_13 = arith.constant 0 : index
      %13 = vector.load %arg9[%c0_12, %c0_13] : memref<128x1xf32, #tpu.memory_space<vmem>>, vector<128x1xf32>
      %14 = arith.truncf %12 : vector<128x128xf32> to vector<128x128xbf16>
      %c0_14 = arith.constant 0 : index
      %c0_15 = arith.constant 0 : index
      %15 = vector.load %arg3[%c0_14, %c0_15] : memref<128x128xbf16, #tpu.memory_space<vmem>>, vector<128x128xbf16>
      %cst_16 = arith.constant dense<0.000000e+00> : vector<128x128xf32>
      %16 = tpu.matmul %14, %15, %cst_16 {dimension_numbers = #tpu.dot_dimension_numbers<[1], [0], [0], [1], [0, 0, 1, 1], [], []>} : vector<128x128xbf16>, vector<128x128xbf16>, vector<128x128xf32> -> vector<128x128xf32>
      %c0_17 = arith.constant 0 : index
      %c0_18 = arith.constant 0 : index
      %17 = vector.load %arg4[%c0_17, %c0_18] : memref<1x128xf32, #tpu.memory_space<vmem>>, vector<1x128xf32>
      %18 = vector.broadcast %17 : vector<1x128xf32> to vector<128x128xf32>
      %19 = arith.addf %16, %18 : vector<128x128xf32>
      %cst_19 = arith.constant 0.000000e+00 : f32
      %20 = vector.broadcast %cst_19 : f32 to vector<128x128xf32>
      %21 = arith.maximumf %19, %20 : vector<128x128xf32>
      %22 = arith.truncf %21 : vector<128x128xf32> to vector<128x128xbf16>
      %c0_20 = arith.constant 0 : index
      %c0_21 = arith.constant 0 : index
      %23 = vector.load %arg5[%c0_20, %c0_21] : memref<128x128xbf16, #tpu.memory_space<vmem>>, vector<128x128xbf16>
      %cst_22 = arith.constant dense<0.000000e+00> : vector<128x128xf32>
      %24 = tpu.matmul %22, %23, %cst_22 {dimension_numbers = #tpu.dot_dimension_numbers<[1], [0], [0], [1], [0, 0, 1, 1], [], []>} : vector<128x128xbf16>, vector<128x128xbf16>, vector<128x128xf32> -> vector<128x128xf32>
      %c0_23 = arith.constant 0 : index
      %c0_24 = arith.constant 0 : index
      %25 = vector.load %arg6[%c0_23, %c0_24] : memref<1x128xf32, #tpu.memory_space<vmem>>, vector<1x128xf32>
      %26 = vector.broadcast %25 : vector<1x128xf32> to vector<128x128xf32>
      %27 = arith.addf %24, %26 : vector<128x128xf32>
      %28 = vector.broadcast %13 : vector<128x1xf32> to vector<128x128xf32>
      %29 = arith.mulf %27, %28 : vector<128x128xf32>
      %30 = arith.truncf %29 : vector<128x128xf32> to vector<128x128xbf16>
      %c0_25 = arith.constant 0 : index
      %c0_26 = arith.constant 0 : index
      %31 = vector.load %arg11[%c0_25, %c0_26] : memref<128x128xbf16, #tpu.memory_space<vmem>>, vector<128x128xbf16>
      tpu.vector_store %arg11[%c0_25, %c0_26], %30 {strides = array<i32>} : memref<128x128xbf16, #tpu.memory_space<vmem>>, vector<128x128xbf16>,
      %c0_27 = arith.constant 0 : index
      %c0_28 = arith.constant 0 : index
      %32 = vector.load %arg10[%c0_27, %c0_28] : memref<2x128xf32, #tpu.memory_space<vmem>>, vector<2x128xf32>
      %cst_29 = arith.constant dense<0.000000e+00> : vector<2x128xf32>
      %33 = tpu.matmul %32, %29, %cst_29 {dimension_numbers = #tpu.dot_dimension_numbers<[1], [0], [0], [1], [0, 0, 1, 1], [], []>} : vector<2x128xf32>, vector<128x128xf32>, vector<2x128xf32> -> vector<2x128xf32>
      %c0_30 = arith.constant 0 : index
      %c0_31 = arith.constant 0 : index
      %34 = vector.load %arg12[%c0_30, %c0_31] : memref<2x128xf32, #tpu.memory_space<vmem>>, vector<2x128xf32>
      tpu.vector_store %arg12[%c0_30, %c0_31], %33 {strides = array<i32>} : memref<2x128xf32, #tpu.memory_space<vmem>>, vector<2x128xf32>,
    } else {
    }
    return
  }
  func.func @transform_0(%arg0: i32) -> (i32, i32) {
    %c0_i32 = arith.constant 0 : i32
    %c0_i32_0 = arith.constant 0 : i32
    return %c0_i32, %arg0 : i32, i32
  }
  func.func @transform_1(%arg0: i32) -> (i32, i32) {
    %c0_i32 = arith.constant 0 : i32
    %c0_i32_0 = arith.constant 0 : i32
    return %arg0, %c0_i32 : i32, i32
  }
  func.func @transform_2(%arg0: i32) -> (i32, i32) {
    %c0_i32 = arith.constant 0 : i32
    %c0_i32_0 = arith.constant 0 : i32
    %c0_i32_1 = arith.constant 0 : i32
    return %c0_i32, %c0_i32_0 : i32, i32
  }
  func.func @transform_3(%arg0: i32) -> (i32, i32) {
    %c0_i32 = arith.constant 0 : i32
    %c0_i32_0 = arith.constant 0 : i32
    %c0_i32_1 = arith.constant 0 : i32
    return %c0_i32, %c0_i32_0 : i32, i32
  }
  func.func @transform_4(%arg0: i32) -> (i32, i32) {
    %c0_i32 = arith.constant 0 : i32
    %c0_i32_0 = arith.constant 0 : i32
    %c0_i32_1 = arith.constant 0 : i32
    return %c0_i32, %c0_i32_0 : i32, i32
  }
  func.func @transform_5(%arg0: i32) -> (i32, i32) {
    %c0_i32 = arith.constant 0 : i32
    %c0_i32_0 = arith.constant 0 : i32
    %c0_i32_1 = arith.constant 0 : i32
    return %c0_i32, %c0_i32_0 : i32, i32
  }
  func.func @transform_6(%arg0: i32) -> (i32, i32) {
    %c0_i32 = arith.constant 0 : i32
    %c0_i32_0 = arith.constant 0 : i32
    %c0_i32_1 = arith.constant 0 : i32
    return %c0_i32, %c0_i32_0 : i32, i32
  }
  func.func @transform_7(%arg0: i32) -> (i32, i32) {
    %c0_i32 = arith.constant 0 : i32
    %c0_i32_0 = arith.constant 0 : i32
    %c0_i32_1 = arith.constant 0 : i32
    return %c0_i32, %c0_i32_0 : i32, i32
  }
  func.func @transform_8(%arg0: i32) -> (i32, i32) {
    %c0_i32 = arith.constant 0 : i32
    %c0_i32_0 = arith.constant 0 : i32
    %c0_i32_1 = arith.constant 0 : i32
    return %c0_i32, %c0_i32_0 : i32, i32
  }
  func.func @transform_9(%arg0: i32) -> (i32, i32) {
    %c0_i32 = arith.constant 0 : i32
    %c0_i32_0 = arith.constant 0 : i32
    %c0_i32_1 = arith.constant 0 : i32
    return %c0_i32, %c0_i32_0 : i32, i32
  }
  func.func @transform_10(%arg0: i32) -> (i32, i32) {
    %c0_i32 = arith.constant 0 : i32
    %c0_i32_0 = arith.constant 0 : i32
    %c0_i32_1 = arith.constant 0 : i32
    return %c0_i32, %c0_i32_0 : i32, i32
  }
  func.func @transform_11(%arg0: i32) -> (i32, i32) {
    %c0_i32 = arith.constant 0 : i32
    %c0_i32_0 = arith.constant 0 : i32
    %c0_i32_1 = arith.constant 0 : i32
    return %c0_i32, %c0_i32_0 : i32, i32
  }
}

module attributes {stable_mosaic.version = 11 : i64} {
  func.func @proj_head_kernel(%arg0: memref<2x640xbf16, #tpu.memory_space<vmem>>, %arg1: memref<640x128xbf16, #tpu.memory_space<vmem>>, %arg2: memref<1x128xf32, #tpu.memory_space<vmem>>, %arg3: memref<128x128xbf16, #tpu.memory_space<vmem>>, %arg4: memref<1x128xf32, #tpu.memory_space<vmem>>, %arg5: memref<2x128xf32, #tpu.memory_space<vmem>>) attributes {dimension_semantics = [], scalar_prefetch = 0 : i64, scratch_operands = 0 : i64, tpu.core_type = #tpu.core_type<tc>} {
    %c0 = arith.constant 0 : index
    %c0_0 = arith.constant 0 : index
    %0 = vector.load %arg0[%c0, %c0_0] : memref<2x640xbf16, #tpu.memory_space<vmem>>, vector<2x640xbf16>
    %c0_1 = arith.constant 0 : index
    %c0_2 = arith.constant 0 : index
    %1 = vector.load %arg1[%c0_1, %c0_2] : memref<640x128xbf16, #tpu.memory_space<vmem>>, vector<640x128xbf16>
    %cst = arith.constant dense<0.000000e+00> : vector<2x128xf32>
    %2 = tpu.matmul %0, %1, %cst {dimension_numbers = #tpu.dot_dimension_numbers<[1], [0], [0], [1], [0, 0, 1, 1], [], []>} : vector<2x640xbf16>, vector<640x128xbf16>, vector<2x128xf32> -> vector<2x128xf32>
    %c0_3 = arith.constant 0 : index
    %c0_4 = arith.constant 0 : index
    %3 = vector.load %arg2[%c0_3, %c0_4] : memref<1x128xf32, #tpu.memory_space<vmem>>, vector<1x128xf32>
    %4 = vector.broadcast %3 : vector<1x128xf32> to vector<2x128xf32>
    %5 = arith.addf %2, %4 : vector<2x128xf32>
    %cst_5 = arith.constant 0.000000e+00 : f32
    %6 = vector.broadcast %cst_5 : f32 to vector<2x128xf32>
    %7 = arith.maximumf %5, %6 : vector<2x128xf32>
    %8 = arith.truncf %7 : vector<2x128xf32> to vector<2x128xbf16>
    %c0_6 = arith.constant 0 : index
    %c0_7 = arith.constant 0 : index
    %9 = vector.load %arg3[%c0_6, %c0_7] : memref<128x128xbf16, #tpu.memory_space<vmem>>, vector<128x128xbf16>
    %cst_8 = arith.constant dense<0.000000e+00> : vector<2x128xf32>
    %10 = tpu.matmul %8, %9, %cst_8 {dimension_numbers = #tpu.dot_dimension_numbers<[1], [0], [0], [1], [0, 0, 1, 1], [], []>} : vector<2x128xbf16>, vector<128x128xbf16>, vector<2x128xf32> -> vector<2x128xf32>
    %c0_9 = arith.constant 0 : index
    %c0_10 = arith.constant 0 : index
    %11 = vector.load %arg4[%c0_9, %c0_10] : memref<1x128xf32, #tpu.memory_space<vmem>>, vector<1x128xf32>
    %12 = vector.broadcast %11 : vector<1x128xf32> to vector<2x128xf32>
    %13 = arith.addf %10, %12 : vector<2x128xf32>
    %c0_11 = arith.constant 0 : index
    %c0_12 = arith.constant 0 : index
    %14 = vector.load %arg5[%c0_11, %c0_12] : memref<2x128xf32, #tpu.memory_space<vmem>>, vector<2x128xf32>
    tpu.vector_store %arg5[%c0_11, %c0_12], %13 {strides = array<i32>} : memref<2x128xf32, #tpu.memory_space<vmem>>, vector<2x128xf32>,
    return
  }
}

</mosaic_0001>

<bundles_post_ra>
// kernel: net_forward.6
= control target key start
LH: loop header
LB: loop body
LE: loop exit
PB: predicated region body
PF: predicated region fallthrough
CT: control target
= control target key end

     0   :  { %v1183_v56 = vmov 0   ;;  %s1767_s1 = inlined_call_operand.vmem [shape: bf16[128,128], index: 1, kind: input, shape index: {}]   ;;  %s1768_s0 = inlined_call_operand.vmem [shape: bf16[128,128], index: 0, kind: input, shape index: {}]   ;;  %s1769_s2 = inlined_call_operand.vmem [shape: bf16[128,128], index: 2, kind: input, shape index: {}]   ;;  %s1770_s3 = inlined_call_operand.vmem [shape: f32[1,128], index: 3, kind: input, shape index: {}]   ;;  %s1771_s4 = inlined_call_operand.vmem [shape: bf16[128,128], index: 4, kind: input, shape index: {}]   ;;  %s1772_s5 = inlined_call_operand.vmem [shape: f32[1,128], index: 5, kind: input, shape index: {}]   ;;  %s1773_s8 = inlined_call_operand.vmem [shape: f32[128,1], index: 8, kind: input, shape index: {}]   ;;  %s1774_s6 = inlined_call_operand.vmem [shape: f32[1,128], index: 6, kind: input, shape index: {}]   ;;  %s1775_s7 = inlined_call_operand.vmem [shape: f32[1,128], index: 7, kind: input, shape index: {}]   ;;  %s1776_s10 = inlined_call_operand.vmem [shape: bf16[128,128], index: 10, kind: output, shape index: {0}]   ;;  %s1777_s9 = inlined_call_operand.vmem [shape: f32[2,128], index: 9, kind: input, shape index: {}]   ;;  %s1778_s11 = inlined_call_operand.vmem [shape: f32[2,128], index: 11, kind: output, shape index: {1}]  }
   0x1   :  { %v1082_v0 = vld [vmem:[%s1767_s1 + $0x38] sm:$0xff]  ;;  %v1081_v1 = vld [vmem:[%s1767_s1 + $0x30] sm:$0xff]  ;;  %v1080_v2 = vld [vmem:[%s1767_s1 + $0x28] sm:$0xff]  ;;  %1172 = vset.pattern.permute.xlu0 %v1183_v56  ;;  %1173 = vset.pattern.permute.xlu1 %v1183_v56 }
   0x2   :  { %1146 = vmatpush.bf16.msra.mxu3 %v1082_v0  ;;  %201 = vmatpush.bf16.msra.mxu0 %v1082_v0  ;;  %v1079_v3 = vld [vmem:[%s1767_s1 + $0x20] sm:$0xff]  ;;  %v1078_v4 = vld [vmem:[%s1767_s1 + $0x18] sm:$0xff]  ;;  %v1077_v5 = vld [vmem:[%s1767_s1 + $0x10] sm:$0xff] }
   0x3   :  { %v1076_v6 = vld [vmem:[%s1767_s1 + $0x8] sm:$0xff]  ;;  %v1075_v7 = vld [vmem:[%s1767_s1] sm:$0xff]  ;;  %v1069_v10 = vld [vmem:[%s1768_s0 + $0x10] sm:$0xff]  ;;  %1174 = vset.pattern.permute.xlu2 %v1183_v56 }
   0x4   :  { %v1068_v8 = vld [vmem:[%s1768_s0 + $0x8] sm:$0xff]  ;;  %v1067_v9 = vld [vmem:[%s1768_s0] sm:$0xff]  ;;  %v1070_v11 = vld [vmem:[%s1768_s0 + $0x18] sm:$0xff] }
   0x5   :  { %v1071_v12 = vld [vmem:[%s1768_s0 + $0x20] sm:$0xff]  ;;  %v1072_v13 = vld [vmem:[%s1768_s0 + $0x28] sm:$0xff]  ;;  %v1090_v14 = vld [vmem:[%s1769_s2 + $0x38] sm:$0xff] }
   0x6   :  { %1147 = vmatpush.bf16.msra.mxu3 %v1081_v1  ;;  %202 = vmatpush.bf16.msra.mxu0 %v1081_v1  ;;  %v1089_v15 = vld [vmem:[%s1769_s2 + $0x30] sm:$0xff]  ;;  %v1088_v16 = vld [vmem:[%s1769_s2 + $0x28] sm:$0xff]  ;;  %v1087_v17 = vld [vmem:[%s1769_s2 + $0x20] sm:$0xff] }
   0x7   :  { %1154 = vmatpush.bf16.msra.mxu1 %v1090_v14  ;;  %v1073_v18 = vld [vmem:[%s1768_s0 + $0x30] sm:$0xff]  ;;  %v1086_v19 = vld [vmem:[%s1769_s2 + $0x18] sm:$0xff]  ;;  %v1084_v22 = vld [vmem:[%s1769_s2 + $0x8] sm:$0xff] }
   0x8   :  { %v1074_v20 = vld [vmem:[%s1768_s0 + $0x38] sm:$0xff]  ;;  %v1085_v21 = vld [vmem:[%s1769_s2 + $0x10] sm:$0xff]  ;;  %v1083_v23 = vld [vmem:[%s1769_s2] sm:$0xff] }
   0x9   :  { %v1098_v42 = vld [vmem:[%s1771_s4 + $0x38] sm:$0xff]  ;;  %v1097_v43 = vld [vmem:[%s1771_s4 + $0x30] sm:$0xff]  ;;  %v1096_v45 = vld [vmem:[%s1771_s4 + $0x28] sm:$0xff] }
   0xa   :  { %1148 = vmatpush.bf16.msra.mxu3 %v1080_v2  ;;  %203 = vmatpush.bf16.msra.mxu0 %v1080_v2  ;;  %v1095_v46 = vld [vmem:[%s1771_s4 + $0x20] sm:$0xff]  ;;  %v1094_v50 = vld [vmem:[%s1771_s4 + $0x18] sm:$0xff]  ;;  %v1093_v51 = vld [vmem:[%s1771_s4 + $0x10] sm:$0xff] }
   0xb   :  { %1155 = vmatpush.bf16.msra.mxu1 %v1089_v15  ;;  %1162 = vmatpush.bf16.msra.mxu2 %v1098_v42  ;;  %v1092_v54 = vld [vmem:[%s1771_s4 + $0x8] sm:$0xff]  ;;  %v1091_v55 = vld [vmem:[%s1771_s4] sm:$0xff]  ;;  %v303_v2 = vld [vmem:[%s1773_s8 + $0x10] sm:$0xff] }
   0xc   :  { %v301_v57 = vld [vmem:[%s1773_s8] sm:$0xff]  ;;  %v302_v62 = vld [vmem:[%s1773_s8 + $0x8] sm:$0xff]  ;;  %611 = vperm.xlu1 %1173, %v303_v2  }
   0xd   :  { %601 = vperm.xlu0 %1172, %v301_v57   ;;  %v1347_v59 = vld [vmem:[%s1770_s3] ss:$0 sm:$0xff] }
   0xe   :  { %1149 = vmatpush.bf16.msra.mxu3 %v1079_v3  ;;  %204 = vmatpush.bf16.msra.mxu0 %v1079_v3 }
   0xf   :  { %1156 = vmatpush.bf16.msra.mxu1 %v1088_v16  ;;  %1163 = vmatpush.bf16.msra.mxu2 %v1097_v43 }
  0x12   :  { %1150 = vmatpush.bf16.msra.mxu3 %v1078_v4  ;;  %205 = vmatpush.bf16.msra.mxu0 %v1078_v4 }
  0x13   :  { %1157 = vmatpush.bf16.msra.mxu1 %v1087_v17  ;;  %1164 = vmatpush.bf16.msra.mxu2 %v1096_v45 }
  0x15   :  { %606 = vperm.xlu0 %1172, %v302_v62  }
  0x16   :  { %1151 = vmatpush.bf16.msra.mxu3 %v1077_v5  ;;  %206 = vmatpush.bf16.msra.mxu0 %v1077_v5 }
  0x17   :  { %1158 = vmatpush.bf16.msra.mxu1 %v1086_v19  ;;  %1165 = vmatpush.bf16.msra.mxu2 %v1095_v46 }
  0x1a   :  { %1152 = vmatpush.bf16.msra.mxu3 %v1076_v6  ;;  %207 = vmatpush.bf16.msra.mxu0 %v1076_v6 }
  0x1b   :  { %1159 = vmatpush.bf16.msra.mxu1 %v1085_v21  ;;  %1166 = vmatpush.bf16.msra.mxu2 %v1094_v50 }
  0x1e   :  { %1153 = vmatpush.bf16.msra.mxu3 %v1075_v7  ;;  %208 = vmatpush.bf16.msra.mxu0 %v1075_v7 }
  0x1f   :  { %1160 = vmatpush.bf16.msra.mxu1 %v1084_v22  ;;  %1167 = vmatpush.bf16.msra.mxu2 %v1093_v51 }
  0x21   :  { %214 = vmatmul.bf16.vlgmr.msra.gmra.mxu3 %v1068_v8  ;;  %209 = vmatmul.bf16.vlgmr.msra.gmra.mxu0 %v1067_v9 }
  0x22   :  { %393 = vmatpush.bf16.msrb.mxu0 %v1090_v14 }
  0x23   :  { %1161 = vmatpush.bf16.msra.mxu1 %v1083_v23  ;;  %1168 = vmatpush.bf16.msra.mxu2 %v1092_v54 }
  0x26   :  { %394 = vmatpush.bf16.msrb.mxu0 %v1089_v15 }
  0x27   :  { %1169 = vmatpush.bf16.msra.mxu2 %v1091_v55 }
  0x2a   :  { %395 = vmatpush.bf16.msrb.mxu0 %v1088_v16 }
  0x2e   :  { %396 = vmatpush.bf16.msrb.mxu0 %v1087_v17 }
  0x31   :  { %219 = vmatmul.bf16.gmra.mxu3 %v1069_v10  ;;  %v304_v10 = vld [vmem:[%s1773_s8 + $0x18] sm:$0xff] }
  0x32   :  { %397 = vmatpush.bf16.msrb.mxu0 %v1086_v19  ;;  %616 = vperm.xlu1 %1173, %v304_v10  }
  0x36   :  { %398 = vmatpush.bf16.msrb.mxu0 %v1085_v21 }
  0x3a   :  { %399 = vmatpush.bf16.msrb.mxu0 %v1084_v22 }
  0x3e   :  { %400 = vmatpush.bf16.msrb.mxu0 %v1083_v23 }
  0x41   :  { %224 = vmatmul.bf16.gmra.mxu3 %v1070_v11 }
  0x42   :  { %534 = vmatpush.bf16.msra.mxu0 %v1098_v42  ;;  %v314_v42 = vld [vmem:[%s1773_s8 + $0x68] sm:$0xff] }
  0x46   :  { %535 = vmatpush.bf16.msra.mxu0 %v1097_v43 }
  0x4a   :  { %536 = vmatpush.bf16.msra.mxu0 %v1096_v45 }
  0x4e   :  { %537 = vmatpush.bf16.msra.mxu0 %v1095_v46 }
  0x51   :  { %229 = vmatmul.bf16.gmra.mxu3 %v1071_v12 }
  0x52   :  { %538 = vmatpush.bf16.msra.mxu0 %v1094_v50 }
  0x56   :  { %539 = vmatpush.bf16.msra.mxu0 %v1093_v51  ;;  %v312_v51 = vld [vmem:[%s1773_s8 + $0x58] sm:$0xff] }
  0x5a   :  { %540 = vmatpush.bf16.msra.mxu0 %v1092_v54 }
  0x5e   :  { %541 = vmatpush.bf16.msra.mxu0 %v1091_v55  ;;  %v315_v55 = vld [vmem:[%s1773_s8 + $0x70] sm:$0xff] }
  0x61   :  { %234 = vmatmul.bf16.gmra.mxu3 %v1072_v13 }
  0x71   :  { %239 = vmatmul.bf16.gmra.mxu3 %v1073_v18 }
  0x81   :  { %244 = vmatmul.bf16.gmra.mxu3 %v1074_v20  ;;  %v307_v20 = vld [vmem:[%s1773_s8 + $0x30] sm:$0xff] }
  0x82   :  { %631 = vperm.xlu0 %1172, %v307_v20  }
  0x9e   :  { %v210_v24 = vpop.f32.mrf.mxu0 }
  0xa4   :  { %v215_v25 = vpop.f32.mrf.mxu3 }
  0xa6   :  { %v212_v26 = vpop.f32.mrf.mxu0 }
  0xa7   :  { %v317_v27 = vpack.c.bf16 %v212_v26, %v210_v24  ;;  %v305_v26 = vld [vmem:[%s1773_s8 + $0x20] sm:$0xff] }
  0xa8   :  { %621 = vperm.xlu2 %1174, %v305_v26  }
  0xa9   :  { %401 = vmatmul.bf16.vlgmr.msrb.gmra.mxu0 %v317_v27  ;;  %v308_v27 = vld [vmem:[%s1773_s8 + $0x38] sm:$0xff] }
  0xaa   :  { %636 = vperm.xlu1 %1173, %v308_v27  }
  0xac   :  { %v217_v28 = vpop.f32.mrf.mxu3 }
  0xad   :  { %v318_v29 = vpack.c.bf16 %v217_v28, %v215_v25 }
  0xaf   :  { %406 = vmatmul.bf16.vlgmr.msra.gmra.mxu1 %v318_v29 }
  0xb4   :  { %v220_v30 = vpop.f32.mrf.mxu3 }
  0xbc   :  { %v222_v31 = vpop.f32.mrf.mxu3 }
  0xbd   :  { %v319_v32 = vpack.c.bf16 %v222_v31, %v220_v30  ;;  %v306_v30 = vld [vmem:[%s1773_s8 + $0x28] sm:$0xff] }
  0xbe   :  { %v310_v31 = vld [vmem:[%s1773_s8 + $0x48] sm:$0xff]  ;;  %626 = vperm.xlu2 %1174, %v306_v30  }
  0xbf   :  { %411 = vmatmul.bf16.gmra.mxu1 %v319_v32  ;;  %646 = vperm.xlu0 %1172, %v310_v31  }
  0xc4   :  { %v225_v33 = vpop.f32.mrf.mxu3 }
  0xcc   :  { %v227_v34 = vpop.f32.mrf.mxu3 }
  0xcd   :  { %v320_v35 = vpack.c.bf16 %v227_v34, %v225_v33 }
  0xcf   :  { %416 = vmatmul.bf16.gmra.mxu1 %v320_v35 }
  0xd4   :  { %v230_v36 = vpop.f32.mrf.mxu3 }
  0xdc   :  { %v232_v37 = vpop.f32.mrf.mxu3 }
  0xdd   :  { %v321_v38 = vpack.c.bf16 %v232_v37, %v230_v36  ;;  %v313_v37 = vld [vmem:[%s1773_s8 + $0x60] sm:$0xff] }
  0xde   :  { %661 = vperm.xlu0 %1172, %v313_v37  }
  0xdf   :  { %421 = vmatmul.bf16.gmra.mxu1 %v321_v38 }
  0xe4   :  { %v235_v39 = vpop.f32.mrf.mxu3 }
  0xec   :  { %v237_v40 = vpop.f32.mrf.mxu3 }
  0xed   :  { %v322_v41 = vpack.c.bf16 %v237_v40, %v235_v39  ;;  %v311_v39 = vld [vmem:[%s1773_s8 + $0x50] sm:$0xff] }
  0xee   :  { %651 = vperm.xlu1 %1173, %v311_v39  }
  0xef   :  { %426 = vmatmul.bf16.gmra.mxu1 %v322_v41  ;;  %v316_v41 = vld [vmem:[%s1773_s8 + $0x78] sm:$0xff] }
  0xf0   :  { %676 = vperm.xlu0 %1172, %v316_v41  }
  0xf4   :  { %v240_v44 = vpop.f32.mrf.mxu3 }
  0xf6   :  { %666 = vperm.xlu1 %1173, %v314_v42  }
  0xfc   :  { %v242_v47 = vpop.f32.mrf.mxu3 }
  0xfd   :  { %v323_v48 = vpack.c.bf16 %v242_v47, %v240_v44 }
  0xff   :  { %431 = vmatmul.bf16.gmra.mxu1 %v323_v48  ;;  %v309_v48 = vld [vmem:[%s1773_s8 + $0x40] sm:$0xff] }
 0x100   :  { %641 = vperm.xlu2 %1174, %v309_v48  }
 0x104   :  { %v245_v49 = vpop.f32.mrf.mxu3 }
 0x108   :  { %656 = vperm.xlu2 %1174, %v312_v51  }
 0x10c   :  { %v247_v52 = vpop.f32.mrf.mxu3 }
 0x10d   :  { %v324_v53 = vpack.c.bf16 %v247_v52, %v245_v49 }
 0x10f   :  { %436 = vmatmul.bf16.gmra.mxu1 %v324_v53 }
 0x110   :  { %671 = vperm.xlu2 %1174, %v315_v55  }
 0x126   :  { %v402_v58 = vpop.f32.mrf.mxu0 }
 0x127   :  { %v403_v60 = vadd.f32 %v1347_v59, %v402_v58 }
 0x129   :  { %v442_v0 = vmax.f32 %v403_v60, 0.0 }
 0x12c   :  { %v407_v61 = vpop.f32.mrf.mxu1 }
 0x12d   :  { %v408_v4 = vadd.f32 %v1347_v59, %v407_v61 }
 0x12e   :  { %v404_v63 = vpop.f32.mrf.mxu0 }
 0x12f   :  { %v405_v1 = vadd.f32 %v1347_v59, %v404_v63  ;;  %v444_v8 = vmax.f32 %v408_v4, 0.0  ;;  %v1410_v4 = vpop.permute.xlu0 %601 }
 0x131   :  { %v443_v3 = vmax.f32 %v405_v1, 0.0 }
 0x133   :  { %v458_v5 = vpack.c.bf16 %v443_v3, %v442_v0 }
 0x134   :  { %v409_v6 = vpop.f32.mrf.mxu1 }
 0x135   :  { %v410_v7 = vadd.f32 %v1347_v59, %v409_v6  ;;  %542 = vmatmul.bf16.vlgmr.msra.gmra.mxu0 %v458_v5  ;;  %v1415_v5 = vld [vmem:[%s1772_s5] ss:$0 sm:$0xff] }
 0x137   :  { %v445_v9 = vmax.f32 %v410_v7, 0.0 }
 0x139   :  { %v459_v11 = vpack.c.bf16 %v445_v9, %v444_v8  ;;  %v1423_v9 = vpop.permute.xlu1 %611 }
 0x13b   :  { %547 = vmatmul.bf16.vlgmr.msra.gmra.mxu2 %v459_v11 }
 0x13c   :  { %v412_v12 = vpop.f32.mrf.mxu1 }
 0x13d   :  { %v413_v13 = vadd.f32 %v1347_v59, %v412_v12 }
 0x13f   :  { %v446_v16 = vmax.f32 %v413_v13, 0.0  ;;  %v1430_v13 = vpop.permute.xlu0 %606 }
 0x144   :  { %v414_v14 = vpop.f32.mrf.mxu1 }
 0x145   :  { %v415_v15 = vadd.f32 %v1347_v59, %v414_v14 }
 0x147   :  { %v447_v17 = vmax.f32 %v415_v15, 0.0  ;;  %v1468_v42 = vpop.permute.xlu0 %631 }
 0x149   :  { %v460_v18 = vpack.c.bf16 %v447_v17, %v446_v16 }
 0x14b   :  { %552 = vmatmul.bf16.gmra.mxu2 %v460_v18 }
 0x14c   :  { %v417_v19 = vpop.f32.mrf.mxu1 }
 0x14d   :  { %v418_v21 = vadd.f32 %v1347_v59, %v417_v19 }
 0x14f   :  { %v448_v24 = vmax.f32 %v418_v21, 0.0  ;;  %v1445_v21 = vpop.permute.xlu1 %616  ;;  %v1493_v55 = vpop.permute.xlu0 %646 }
 0x154   :  { %v419_v22 = vpop.f32.mrf.mxu1 }
 0x155   :  { %v420_v23 = vadd.f32 %v1347_v59, %v419_v22 }
 0x157   :  { %v449_v25 = vmax.f32 %v420_v23, 0.0 }
 0x159   :  { %v461_v28 = vpack.c.bf16 %v449_v25, %v448_v24 }
 0x15b   :  { %557 = vmatmul.bf16.gmra.mxu2 %v461_v28  ;;  %v1454_v28 = vpop.permute.xlu2 %621 }
 0x15c   :  { %v422_v29 = vpop.f32.mrf.mxu1 }
 0x15d   :  { %v423_v32 = vadd.f32 %v1347_v59, %v422_v29 }
 0x15f   :  { %v450_v35 = vmax.f32 %v423_v32, 0.0 }
 0x164   :  { %v424_v33 = vpop.f32.mrf.mxu1 }
 0x165   :  { %v425_v34 = vadd.f32 %v1347_v59, %v424_v33 }
 0x167   :  { %v451_v36 = vmax.f32 %v425_v34, 0.0 }
 0x169   :  { %v462_v38 = vpack.c.bf16 %v451_v36, %v450_v35 }
 0x16b   :  { %562 = vmatmul.bf16.gmra.mxu2 %v462_v38 }
 0x16c   :  { %v427_v40 = vpop.f32.mrf.mxu1 }
 0x16d   :  { %v428_v43 = vadd.f32 %v1347_v59, %v427_v40  ;;  %v1463_v40 = vpop.permute.xlu2 %626 }
 0x16f   :  { %v452_v46 = vmax.f32 %v428_v43, 0.0 }
 0x174   :  { %v429_v44 = vpop.f32.mrf.mxu1 }
 0x175   :  { %v430_v45 = vadd.f32 %v1347_v59, %v429_v44  ;;  %v1484_v51 = vpop.permute.xlu2 %641 }
 0x177   :  { %v453_v47 = vmax.f32 %v430_v45, 0.0 }
 0x179   :  { %v463_v49 = vpack.c.bf16 %v453_v47, %v452_v46  ;;  %v1475_v47 = vpop.permute.xlu1 %636 }
 0x17b   :  { %567 = vmatmul.bf16.gmra.mxu2 %v463_v49 }
 0x17c   :  { %v432_v50 = vpop.f32.mrf.mxu1 }
 0x17d   :  { %v433_v52 = vadd.f32 %v1347_v59, %v432_v50 }
 0x17f   :  { %v454_v56 = vmax.f32 %v433_v52, 0.0 }
 0x184   :  { %v434_v53 = vpop.f32.mrf.mxu1 }
 0x185   :  { %v435_v54 = vadd.f32 %v1347_v59, %v434_v53 }
 0x187   :  { %v455_v57 = vmax.f32 %v435_v54, 0.0 }
 0x189   :  { %v464_v58 = vpack.c.bf16 %v455_v57, %v454_v56 }
 0x18b   :  { %572 = vmatmul.bf16.gmra.mxu2 %v464_v58 }
 0x18c   :  { %v437_v60 = vpop.f32.mrf.mxu1 }
 0x18d   :  { %v438_v61 = vadd.f32 %v1347_v59, %v437_v60 }
 0x18f   :  { %v456_v0 = vmax.f32 %v438_v61, 0.0 }
 0x194   :  { %v439_v62 = vpop.f32.mrf.mxu1 }
 0x195   :  { %v440_v63 = vadd.f32 %v1347_v59, %v439_v62 }
 0x197   :  { %v457_v1 = vmax.f32 %v440_v63, 0.0 }
 0x199   :  { %v465_v2 = vpack.c.bf16 %v457_v1, %v456_v0  ;;  %v1508_v1 = vpop.permute.xlu1 %651 }
 0x19b   :  { %577 = vmatmul.bf16.gmra.mxu2 %v465_v2 }
 0x1b2   :  { %v543_v3 = vpop.f32.mrf.mxu0 }
 0x1b3   :  { %v1418_v7 = vadd.f32 %v1415_v5, %v543_v3 }
 0x1b5   :  { %v583_v10 = vmax.f32 %v1418_v7, 0.0 }
 0x1b7   :  { %v679_v14 = vmul.f32 %v1410_v4, %v583_v10 }
 0x1ba   :  { %v545_v6 = vpop.f32.mrf.mxu0 }
 0x1bb   :  { %v1421_v8 = vadd.f32 %v1415_v5, %v545_v6 }
 0x1bd   :  { %v584_v11 = vmax.f32 %v1421_v8, 0.0 }
 0x1be   :  { %v548_v59 = vpop.f32.mrf.mxu2 }
 0x1bf   :  { %v1428_v12 = vadd.f32 %v1415_v5, %v548_v59  ;;  %v680_v16 = vmul.f32 %v1430_v13, %v584_v11  ;;  %v1514_v59 = vpop.permute.xlu2 %656 }
 0x1c1   :  { %v585_v15 = vmax.f32 %v1428_v12, 0.0  ;;  %v695_v18 = vadd.f32 %v680_v16, %v679_v14 }
 0x1c3   :  { %v681_v19 = vmul.f32 %v1423_v9, %v585_v15 }
 0x1c5   :  { %v696_v23 = vadd.f32 %v695_v18, %v681_v19 }
 0x1c6   :  { %v550_v17 = vpop.f32.mrf.mxu2 }
 0x1c7   :  { %v1443_v20 = vadd.f32 %v1415_v5, %v550_v17 }
 0x1c9   :  { %v586_v22 = vmax.f32 %v1443_v20, 0.0 }
 0x1cb   :  { %v682_v24 = vmul.f32 %v1445_v21, %v586_v22 }
 0x1cd   :  { %v697_v25 = vadd.f32 %v696_v23, %v682_v24 }
 0x1ce   :  { %v553_v26 = vpop.f32.mrf.mxu2 }
 0x1cf   :  { %v1452_v27 = vadd.f32 %v1415_v5, %v553_v26  ;;  %v1184_v26 = vmov 12.0  }
 0x1d0   :  { %1179 = vrcp.f32 %v1184_v26 }
 0x1d1   :  { %v587_v29 = vmax.f32 %v1452_v27, 0.0 }
 0x1d3   :  { %v683_v30 = vmul.f32 %v1454_v28, %v587_v29 }
 0x1d5   :  { %v698_v31 = vadd.f32 %v697_v25, %v683_v30  ;;  %v1530_v30 = vpop.permute.xlu0 %661 }
 0x1d6   :  { %v555_v32 = vpop.f32.mrf.mxu2 }
 0x1d7   :  { %v1461_v39 = vadd.f32 %v1415_v5, %v555_v32 }
 0x1d9   :  { %v588_v44 = vmax.f32 %v1461_v39, 0.0 }
 0x1db   :  { %v684_v49 = vmul.f32 %v1463_v40, %v588_v44 }
 0x1dd   :  { %v699_v58 = vadd.f32 %v698_v31, %v684_v49 }
 0x1de   :  { %v558_v33 = vpop.f32.mrf.mxu2 }
 0x1df   :  { %v1466_v41 = vadd.f32 %v1415_v5, %v558_v33 }
 0x1e1   :  { %v589_v46 = vmax.f32 %v1466_v41, 0.0 }
 0x1e3   :  { %v685_v53 = vmul.f32 %v1468_v42, %v589_v46 }
 0x1e5   :  { %v700_v63 = vadd.f32 %v699_v58, %v685_v53  ;;  %v1545_v53 = vpop.permute.xlu2 %671 }
 0x1e6   :  { %v560_v34 = vpop.f32.mrf.mxu2 }
 0x1e7   :  { %v1472_v45 = vadd.f32 %v1415_v5, %v560_v34 }
 0x1e9   :  { %v590_v50 = vmax.f32 %v1472_v45, 0.0 }
 0x1eb   :  { %v686_v60 = vmul.f32 %v1475_v47, %v590_v50 }
 0x1ed   :  { %v701_v6 = vadd.f32 %v700_v63, %v686_v60 }
 0x1ee   :  { %v563_v35 = vpop.f32.mrf.mxu2 }
 0x1ef   :  { %v1478_v48 = vadd.f32 %v1415_v5, %v563_v35 }
 0x1f1   :  { %v591_v54 = vmax.f32 %v1478_v48, 0.0 }
 0x1f3   :  { %v687_v0 = vmul.f32 %v1484_v51, %v591_v54 }
 0x1f5   :  { %v702_v18 = vadd.f32 %v701_v6, %v687_v0 }
 0x1f6   :  { %v565_v36 = vpop.f32.mrf.mxu2 }
 0x1f7   :  { %v1487_v52 = vadd.f32 %v1415_v5, %v565_v36 }
 0x1f9   :  { %v592_v61 = vmax.f32 %v1487_v52, 0.0 }
 0x1fb   :  { %v688_v14 = vmul.f32 %v1493_v55, %v592_v61 }
 0x1fd   :  { %v703_v31 = vadd.f32 %v702_v18, %v688_v14  ;;  %v1554_v18 = vpop.permute.xlu0 %676 }
 0x1fe   :  { %v568_v37 = vpop.f32.mrf.mxu2 }
 0x1ff   :  { %v1496_v57 = vadd.f32 %v1415_v5, %v568_v37  ;;  %v1540_v37 = vpop.permute.xlu1 %666 }
 0x201   :  { %v593_v2 = vmax.f32 %v1496_v57, 0.0 }
 0x203   :  { %v689_v23 = vmul.f32 %v1508_v1, %v593_v2 }
 0x205   :  { %v704_v34 = vadd.f32 %v703_v31, %v689_v23 }
 0x206   :  { %v570_v38 = vpop.f32.mrf.mxu2 }
 0x207   :  { %v1503_v62 = vadd.f32 %v1415_v5, %v570_v38  ;;  %v1180_v38 = vpop.eup %1179 }
 0x208   :  { %v717_v0 = vmul.f32 12.0, %v1180_v38  ;;  %vm721_vm0 = vweird.f32 %v1180_v38 }
 0x209   :  { %v594_v16 = vmax.f32 %v1503_v62, 0.0 }
 0x20a   :  { %v718_v26 = vsub.f32 1.0, %v717_v0 }
 0x20b   :  { %v690_v32 = vmul.f32 %v1514_v59, %v594_v16 }
 0x20e   :  { %v573_v43 = vpop.f32.mrf.mxu2 }
 0x20f   :  { %v1512_v3 = vadd.f32 %v1415_v5, %v573_v43  ;;  %v705_v43 = vadd.f32 %v704_v34, %v690_v32  ;;  %v719_v34 = vmul.f32 %v1180_v38, %v718_v26 }
 0x211   :  { %v595_v24 = vmax.f32 %v1512_v3, 0.0 }
 0x213   :  { %v691_v35 = vmul.f32 %v1530_v30, %v595_v24 }
 0x215   :  { %v706_v58 = vadd.f32 %v705_v43, %v691_v35 }
 0x216   :  { %v575_v56 = vpop.f32.mrf.mxu2 }
 0x217   :  { %v1521_v17 = vadd.f32 %v1415_v5, %v575_v56 }
 0x219   :  { %v1780_v33 = vmax.f32 %v1521_v17, 0.0 }
 0x21b   :  { %v692_v49 = vmul.f32 %v1540_v37, %v1780_v33 }
 0x21d   :  { %v707_v6 = vadd.f32 %v706_v58, %v692_v49 }
 0x21e   :  { %v578_v19 = vpop.f32.mrf.mxu2 }
 0x21f   :  { %v1528_v25 = vadd.f32 %v1415_v5, %v578_v19 }
 0x221   :  { %v1779_v36 = vmax.f32 %v1528_v25, 0.0 }
 0x223   :  { %v693_v60 = vmul.f32 %v1545_v53, %v1779_v36  ;;  %v720_v36 = vadd.f32 %v1180_v38, %v719_v34 }
 0x225   :  { %v708_v19 = vadd.f32 %v707_v6, %v693_v60  ;;  %v1559_v49 = vsel %vm721_vm0, %v1180_v38, %v720_v36 }
 0x226   :  { %v580_v56 = vpop.f32.mrf.mxu2 }
 0x227   :  { %v1551_v63 = vadd.f32 %v1415_v5, %v580_v56 }
 0x229   :  { %v598_v14 = vmax.f32 %v1551_v63, 0.0 }
 0x22b   :  { %v694_v23 = vmul.f32 %v1554_v18, %v598_v14 }
 0x22d   :  { %v709_v31 = vadd.f32 %v708_v19, %v694_v23 }
 0x22f   :  { %v710_v32 = vrot.slane %v709_v31, 4 }
 0x231   :  { %v711_v35 = vadd.f32 %v710_v32, %v709_v31 }
 0x233   :  { %v712_v43 = vrot.slane %v711_v35, 2 }
 0x235   :  { %v713_v5 = vadd.f32 %v712_v43, %v711_v35 }
 0x237   :  { %v714_v56 = vrot.slane %v713_v5, 1 }
 0x239   :  { %v715_v58 = vadd.f32 %v714_v56, %v713_v5 }
 0x23b   :  { %v723_v33 = vmul.f32 %v1559_v49, %v715_v58 }
 0x23d   :  { %v1564_v60 = vsub.f32 %v583_v10, %v723_v33  ;;  %v1568_v0 = vsub.f32 %v584_v11, %v723_v33  ;;  %v1572_v6 = vsub.f32 %v585_v15, %v723_v33  ;;  %v1576_v19 = vsub.f32 %v586_v22, %v723_v33 }
 0x23e   :  { %v1580_v36 = vsub.f32 %v587_v29, %v723_v33  ;;  %v1592_v15 = vsub.f32 %v588_v44, %v723_v33  ;;  %v1598_v22 = vsub.f32 %v589_v46, %v723_v33  ;;  %v1605_v23 = vsub.f32 %v590_v50, %v723_v33 }
 0x23f   :  { %v740_v7 = vmul.f32 %v1564_v60, %v1564_v60  ;;  %v741_v8 = vmul.f32 %v1568_v0, %v1568_v0  ;;  %v742_v10 = vmul.f32 %v1572_v6, %v1572_v6  ;;  %v743_v20 = vmul.f32 %v1576_v19, %v1576_v19 }
 0x240   :  { %v744_v27 = vmul.f32 %v1580_v36, %v1580_v36  ;;  %v745_v39 = vmul.f32 %v1592_v15, %v1592_v15  ;;  %v1612_v41 = vsub.f32 %v591_v54, %v723_v33  ;;  %v746_v46 = vmul.f32 %v1598_v22, %v1598_v22 }
 0x241   :  { %v756_v11 = vmul.f32 %v740_v7, %v1410_v4  ;;  %v757_v12 = vmul.f32 %v741_v8, %v1430_v13  ;;  %v758_v29 = vmul.f32 %v742_v10, %v1423_v9  ;;  %v759_v44 = vmul.f32 %v743_v20, %v1445_v21 }
 0x242   :  { %v760_v31 = vmul.f32 %v744_v27, %v1454_v28  ;;  %v1619_v45 = vsub.f32 %v592_v61, %v723_v33  ;;  %v747_v50 = vmul.f32 %v1605_v23, %v1605_v23  ;;  %v761_v34 = vmul.f32 %v745_v39, %v1463_v40 }
 0x243   :  { %v772_v38 = vadd.f32 %v757_v12, %v756_v11  ;;  %v734_v48 = vsub.f32 %v593_v2, %v723_v33  ;;  %v748_v54 = vmul.f32 %v1612_v41, %v1612_v41  ;;  %v762_v43 = vmul.f32 %v746_v46, %v1468_v42 }
 0x244   :  { %v735_v52 = vsub.f32 %v594_v16, %v723_v33  ;;  %v749_v61 = vmul.f32 %v1619_v45, %v1619_v45  ;;  %v763_v56 = vmul.f32 %v747_v50, %v1475_v47  ;;  %v736_v7 = vsub.f32 %v595_v24, %v723_v33 }
 0x245   :  { %v773_v26 = vadd.f32 %v772_v38, %v758_v29  ;;  %v750_v57 = vmul.f32 %v734_v48, %v734_v48  ;;  %v764_v2 = vmul.f32 %v748_v54, %v1484_v51  ;;  %v1781_v10 = vmax.f32 %v1521_v17, 0.0 }
 0x246   :  { %v751_v12 = vmul.f32 %v735_v52, %v735_v52  ;;  %v765_v62 = vmul.f32 %v749_v61, %v1493_v55  ;;  %v1782_v20 = vmax.f32 %v1528_v25, 0.0  ;;  %v752_v29 = vmul.f32 %v736_v7, %v736_v7 }
 0x247   :  { %v774_v32 = vadd.f32 %v773_v26, %v759_v44  ;;  %v737_v11 = vsub.f32 %v1781_v10, %v723_v33  ;;  %v766_v38 = vmul.f32 %v750_v57, %v1508_v1  ;;  %v739_v3 = vsub.f32 %v598_v14, %v723_v33 }
 0x248   :  { %v738_v27 = vsub.f32 %v1782_v20, %v723_v33  ;;  %v767_v44 = vmul.f32 %v751_v12, %v1514_v59  ;;  %v768_v46 = vmul.f32 %v752_v29, %v1530_v30  ;;  %v1654_v29 = vld [vmem:[%s1774_s6] ss:$0 sm:$0xff] }
 0x249   :  { %v775_v35 = vadd.f32 %v774_v32, %v760_v31  ;;  %v753_v24 = vmul.f32 %v737_v11, %v737_v11  ;;  %v755_v32 = vmul.f32 %v739_v3, %v739_v3 }
 0x24a   :  { %v754_v17 = vmul.f32 %v738_v27, %v738_v27 }
 0x24b   :  { %v776_v5 = vadd.f32 %v775_v35, %v761_v34  ;;  %v769_v50 = vmul.f32 %v753_v24, %v1540_v37  ;;  %v771_v54 = vmul.f32 %v755_v32, %v1554_v18 }
 0x24c   :  { %v770_v34 = vmul.f32 %v754_v17, %v1545_v53 }
 0x24d   :  { %v777_v58 = vadd.f32 %v776_v5, %v762_v43 }
 0x24f   :  { %v778_v8 = vadd.f32 %v777_v58, %v763_v56 }
 0x251   :  { %v779_v16 = vadd.f32 %v778_v8, %v764_v2 }
 0x253   :  { %v780_v39 = vadd.f32 %v779_v16, %v765_v62 }
 0x255   :  { %v781_v26 = vadd.f32 %v780_v39, %v766_v38  ;;  %v1662_v39 = vld [vmem:[%s1775_s7] ss:$0 sm:$0xff] }
 0x257   :  { %v782_v31 = vadd.f32 %v781_v26, %v767_v44 }
 0x259   :  { %v783_v25 = vadd.f32 %v782_v31, %v768_v46 }
 0x25b   :  { %v784_v35 = vadd.f32 %v783_v25, %v769_v50 }
 0x25d   :  { %v785_v43 = vadd.f32 %v784_v35, %v770_v34 }
 0x25f   :  { %v786_v63 = vadd.f32 %v785_v43, %v771_v54 }
 0x261   :  { %v787_v33 = vrot.slane %v786_v63, 4 }
 0x263   :  { %v788_v14 = vadd.f32 %v787_v33, %v786_v63 }
 0x265   :  { %v789_v5 = vrot.slane %v788_v14, 2 }
 0x267   :  { %v790_v61 = vadd.f32 %v789_v5, %v788_v14 }
 0x269   :  { %v791_v56 = vrot.slane %v790_v61, 1 }
 0x26b   :  { %v792_v58 = vadd.f32 %v791_v56, %v790_v61 }
 0x26d   :  { %v793_v57 = vmul.f32 %v792_v58, %v1559_v49 }
 0x26f   :  { %v794_v2 = vadd.f32 1e-05, %v793_v57 }
 0x271   :  { %1181 = vrsqrt.f32 %v794_v2  ;;  %vm801_vm2 = vweird.f32 %v794_v2 }
 0x277   :  { %v1182_v8 = vpop.eup %1181 }
 0x278   :  { %v796_v10 = vmul.f32 %v1182_v8, %v794_v2  ;;  %vm802_vm1 = vweird.f32 %v1182_v8 }
 0x279   :  { %vm803_vm3 = vmor %vm801_vm2, %vm802_vm1 }
 0x27a   :  { %v797_v12 = vmul.f32 %v1182_v8, %v796_v10 }
 0x27c   :  { %v798_v62 = vmul.f32 0.5, %v797_v12 }
 0x27e   :  { %v799_v16 = vsub.f32 1.5, %v798_v62 }
 0x280   :  { %v800_v20 = vmul.f32 %v1182_v8, %v799_v16 }
 0x282   :  { %v1656_v38 = vsel %vm803_vm3, %v1182_v8, %v800_v20 }
 0x283   :  { %v820_v49 = vmul.f32 %v1656_v38, %v739_v3  ;;  %v819_v24 = vmul.f32 %v1656_v38, %v738_v27  ;;  %v818_v44 = vmul.f32 %v1656_v38, %v737_v11  ;;  %v817_v26 = vmul.f32 %v1656_v38, %v736_v7 }
 0x284   :  { %v816_v17 = vmul.f32 %v1656_v38, %v735_v52  ;;  %v815_v46 = vmul.f32 %v1656_v38, %v734_v48  ;;  %v814_v31 = vmul.f32 %v1656_v38, %v1619_v45  ;;  %v813_v3 = vmul.f32 %v1656_v38, %v1612_v41 }
 0x285   :  { %v840_v32 = vmul.f32 %v1654_v29, %v820_v49  ;;  %v839_v50 = vmul.f32 %v1654_v29, %v819_v24  ;;  %v838_v27 = vmul.f32 %v1654_v29, %v818_v44  ;;  %v837_v11 = vmul.f32 %v1654_v29, %v817_v26 }
 0x286   :  { %v836_v7 = vmul.f32 %v1654_v29, %v816_v17  ;;  %v835_v52 = vmul.f32 %v1654_v29, %v815_v46  ;;  %v834_v48 = vmul.f32 %v1654_v29, %v814_v31  ;;  %v833_v25 = vmul.f32 %v1654_v29, %v813_v3 }
 0x287   :  { %v860_v45 = vadd.f32 %v1662_v39, %v840_v32  ;;  %v859_v41 = vadd.f32 %v1662_v39, %v839_v50  ;;  %v858_v34 = vadd.f32 %v1662_v39, %v838_v27  ;;  %v857_v35 = vadd.f32 %v1662_v39, %v837_v11 }
 0x288   :  { %v856_v54 = vadd.f32 %v1662_v39, %v836_v7  ;;  %v855_v43 = vadd.f32 %v1662_v39, %v835_v52  ;;  %v854_v63 = vadd.f32 %v1662_v39, %v834_v48  ;;  %v853_v33 = vadd.f32 %v1662_v39, %v833_v25 }
 0x289   :  { %v876_v14 = vmul.f32 %v860_v45, %v1554_v18  ;;  %v875_v5 = vmul.f32 %v859_v41, %v1545_v53  ;;  %v874_v61 = vmul.f32 %v858_v34, %v1540_v37  ;;  %v873_v56 = vmul.f32 %v857_v35, %v1530_v30 }
 0x28a   :  { %v872_v58 = vmul.f32 %v856_v54, %v1514_v59  ;;  %v871_v57 = vmul.f32 %v855_v43, %v1508_v1  ;;  %v870_v2 = vmul.f32 %v854_v63, %v1493_v55  ;;  %v869_v8 = vmul.f32 %v853_v33, %v1484_v51 }
 0x28b   :  { %910 = vmatpush.msrb.mxu0 %v876_v14  ;;  %v1137_v10 = vpack.c.bf16 %v876_v14, %v875_v5  ;;  %v1132_v12 = vpack.c.bf16 %v874_v61, %v873_v56  ;;  %v812_v18 = vmul.f32 %v1656_v38, %v1605_v23  ;;  %v811_v53 = vmul.f32 %v1656_v38, %v1598_v22 }
 0x28c   :  { %v1127_v37 = vpack.c.bf16 %v872_v58, %v871_v57  ;;  %v1122_v62 = vpack.c.bf16 %v870_v2, %v869_v8  ;;  %v810_v59 = vmul.f32 %v1656_v38, %v1592_v15  ;;  %v809_v1 = vmul.f32 %v1656_v38, %v1580_v36 }
 0x28d   :  { %1145 = vst [vmem:[%s1776_s10 + $0x38] sm:$0xff] %v1137_v10   ;;  %911 = vmatpush.msrb.mxu0 %v875_v5  ;;  %v832_v51 = vmul.f32 %v1654_v29, %v812_v18  ;;  %v831_v55 = vmul.f32 %v1654_v29, %v811_v53  ;;  %v808_v30 = vmul.f32 %v1656_v38, %v1576_v19 }
 0x28e   :  { %1144 = vst [vmem:[%s1776_s10 + $0x30] sm:$0xff] %v1132_v12   ;;  %v830_v15 = vmul.f32 %v1654_v29, %v810_v59  ;;  %v829_v36 = vmul.f32 %v1654_v29, %v809_v1  ;;  %v807_v22 = vmul.f32 %v1656_v38, %v1572_v6  ;;  %v806_v23 = vmul.f32 %v1656_v38, %v1568_v0 }
 0x28f   :  { %912 = vmatpush.msrb.mxu0 %v874_v61  ;;  %1143 = vst [vmem:[%s1776_s10 + $0x28] sm:$0xff] %v1127_v37   ;;  %v852_v19 = vadd.f32 %v1662_v39, %v832_v51  ;;  %v851_v16 = vadd.f32 %v1662_v39, %v831_v55  ;;  %v828_v20 = vmul.f32 %v1654_v29, %v808_v30 }
 0x290   :  { %1142 = vst [vmem:[%s1776_s10 + $0x20] sm:$0xff] %v1122_v62   ;;  %v850_v6 = vadd.f32 %v1662_v39, %v830_v15  ;;  %v849_v49 = vadd.f32 %v1662_v39, %v829_v36  ;;  %v827_v0 = vmul.f32 %v1654_v29, %v807_v22  ;;  %v826_v24 = vmul.f32 %v1654_v29, %v806_v23 }
 0x291   :  { %913 = vmatpush.msrb.mxu0 %v873_v56  ;;  %v868_v44 = vmul.f32 %v852_v19, %v1475_v47  ;;  %v867_v26 = vmul.f32 %v851_v16, %v1468_v42  ;;  %v848_v17 = vadd.f32 %v1662_v39, %v828_v20  ;;  %v805_v46 = vmul.f32 %v1656_v38, %v1564_v60 }
 0x292   :  { %v866_v31 = vmul.f32 %v850_v6, %v1463_v40  ;;  %v865_v3 = vmul.f32 %v849_v49, %v1454_v28  ;;  %v847_v32 = vadd.f32 %v1662_v39, %v827_v0  ;;  %v846_v50 = vadd.f32 %v1662_v39, %v826_v24 }
 0x293   :  { %914 = vmatpush.msrb.mxu0 %v872_v58  ;;  %v1117_v27 = vpack.c.bf16 %v868_v44, %v867_v26  ;;  %v864_v11 = vmul.f32 %v848_v17, %v1445_v21  ;;  %v825_v47 = vmul.f32 %v1654_v29, %v805_v46 }
 0x294   :  { %v1112_v42 = vpack.c.bf16 %v866_v31, %v865_v3  ;;  %v863_v7 = vmul.f32 %v847_v32, %v1423_v9  ;;  %v862_v28 = vmul.f32 %v846_v50, %v1430_v13 }
 0x295   :  { %915 = vmatpush.msrb.mxu0 %v871_v57  ;;  %1141 = vst [vmem:[%s1776_s10 + $0x18] sm:$0xff] %v1117_v27   ;;  %v845_v40 = vadd.f32 %v1662_v39, %v825_v47 }
 0x296   :  { %1140 = vst [vmem:[%s1776_s10 + $0x10] sm:$0xff] %v1112_v42   ;;  %v1107_v60 = vpack.c.bf16 %v864_v11, %v863_v7 }
 0x297   :  { %916 = vmatpush.msrb.mxu0 %v870_v2  ;;  %v861_v21 = vmul.f32 %v845_v40, %v1410_v4  ;;  %v909_v4 = vld [vmem:[%s1777_s9] sm:$0x3] }
 0x298   :  { %1139 = vst [vmem:[%s1776_s10 + $0x8] sm:$0xff] %v1107_v60  }
 0x299   :  { %917 = vmatpush.msrb.mxu0 %v869_v8  ;;  %v1102_v9 = vpack.c.bf16 %v862_v28, %v861_v21 }
 0x29b   :  { %918 = vmatpush.msrb.mxu0 %v868_v44  ;;  %1103 = vst [vmem:[%s1776_s10] sm:$0xff] %v1102_v9  }
 0x29d   :  { %919 = vmatpush.msrb.mxu0 %v867_v26 }
 0x29f   :  { %920 = vmatpush.msrb.mxu0 %v866_v31 }
 0x2a1   :  { %921 = vmatpush.msrb.mxu0 %v865_v3 }
 0x2a3   :  { %922 = vmatpush.msrb.mxu0 %v864_v11 }
 0x2a5   :  { %923 = vmatpush.msrb.mxu0 %v863_v7 }
 0x2a7   :  { %924 = vmatpush.msrb.mxu0 %v862_v28 }
 0x2a9   :  { %925 = vmatpush.msrb.mxu0 %v861_v21 }
 0x2aa   :  { %926 = vmatmul.f32.vlgmr.msrb.gmra.mxu0 %v909_v4 }
 0x327   :  { %v927_v13 = vpop.f32.mrf.mxu0 }
 0x328   :  { %930 = vst [vmem:[%s1778_s11] sm:$0x3] %v927_v13 }

// kernel: net_forward.10
= control target key start
LH: loop header
LB: loop body
LE: loop exit
PB: predicated region body
PF: predicated region fallthrough
CT: control target
= control target key end

     0   :  { %s1305_s0 = inlined_call_operand.vmem [shape: bf16[128,128], index: 0, kind: input, shape index: {}]   ;;  %s1306_s1 = inlined_call_operand.vmem [shape: bf16[128,128], index: 1, kind: input, shape index: {}]   ;;  %s1307_s2 = inlined_call_operand.vmem [shape: bf16[128,128], index: 2, kind: input, shape index: {}]   ;;  %s1308_s3 = inlined_call_operand.vmem [shape: f32[1,128], index: 3, kind: input, shape index: {}]   ;;  %s1309_s4 = inlined_call_operand.vmem [shape: bf16[128,128], index: 4, kind: input, shape index: {}]   ;;  %s1310_s5 = inlined_call_operand.vmem [shape: f32[1,128], index: 5, kind: input, shape index: {}]   ;;  %s1311_s6 = inlined_call_operand.vmem [shape: f32[1,128], index: 6, kind: input, shape index: {}]   ;;  %s1312_s7 = inlined_call_operand.vmem [shape: f32[1,128], index: 7, kind: input, shape index: {}]   ;;  %s1313_s8 = inlined_call_operand.vmem [shape: f32[128,1], index: 8, kind: input, shape index: {}]   ;;  %s1314_s9 = inlined_call_operand.vmem [shape: f32[2,128], index: 9, kind: input, shape index: {}]   ;;  %s1315_s10 = inlined_call_operand.hbm [shape: bf16[128,128], index: 10, kind: output, shape index: {0}]   ;;  %s1316_s11 = inlined_call_operand.vmem [shape: f32[2,128], index: 11, kind: output, shape index: {1}]  }
   0x1   :  { %v899_v0 = vld [vmem:[%s1306_s1 + $0x38] sm:$0xff]  ;;  %v898_v1 = vld [vmem:[%s1306_s1 + $0x30] sm:$0xff] }
   0x2   :  { %963 = vmatpush.bf16.msra.mxu3 %v899_v0  ;;  %202 = vmatpush.bf16.msra.mxu0 %v899_v0 }
   0x3   :  { %17 = vsyncpa [#allocation4], 0  ;;  %v897_v2 = vld [vmem:[%s1306_s1 + $0x28] sm:$0xff]  ;;  %v896_v3 = vld [vmem:[%s1306_s1 + $0x20] sm:$0xff]  ;;  %v1022_v53 = vmov 0   ;;  %s740_s21 = sshll.u32 %s1315_s10, 4  ;;  %s741_s21 = int_to_ptr.hbm [resolvable:$true] %s740_s21 }
   0x4   :  { %v895_v4 = vld [vmem:[%s1306_s1 + $0x18] sm:$0xff]  ;;  %v894_v5 = vld [vmem:[%s1306_s1 + $0x10] sm:$0xff]  ;;  %v893_v6 = vld [vmem:[%s1306_s1 + $0x8] sm:$0xff]  ;;  %992 = vset.pattern.permute.xlu1 %v1022_v53  ;;  %991 = vset.pattern.permute.xlu0 %v1022_v53  ;;  %s1024_s23 = smov 64   ;;  %s1025_s24 = smov 4  }
   0x5   :  { %v892_v7 = vld [vmem:[%s1306_s1] sm:$0xff]  ;;  %v885_v8 = vld [vmem:[%s1305_s0 + $0x8] sm:$0xff]  ;;  %v886_v9 = vld [vmem:[%s1305_s0 + $0x10] sm:$0xff]  ;;  %993 = vset.pattern.permute.xlu2 %v1022_v53 }
   0x6   :  { %964 = vmatpush.bf16.msra.mxu3 %v898_v1  ;;  %203 = vmatpush.bf16.msra.mxu0 %v898_v1  ;;  %v887_v10 = vld [vmem:[%s1305_s0 + $0x18] sm:$0xff]  ;;  %v888_v11 = vld [vmem:[%s1305_s0 + $0x20] sm:$0xff]  ;;  %v889_v12 = vld [vmem:[%s1305_s0 + $0x28] sm:$0xff] }
   0x7   :  { %v884_v13 = vld [vmem:[%s1305_s0] sm:$0xff]  ;;  %v907_v14 = vld [vmem:[%s1307_s2 + $0x38] sm:$0xff]  ;;  %v906_v15 = vld [vmem:[%s1307_s2 + $0x30] sm:$0xff] }
   0x8   :  { %971 = vmatpush.bf16.msra.mxu1 %v907_v14  ;;  %v905_v16 = vld [vmem:[%s1307_s2 + $0x28] sm:$0xff]  ;;  %v904_v17 = vld [vmem:[%s1307_s2 + $0x20] sm:$0xff]  ;;  %v890_v18 = vld [vmem:[%s1305_s0 + $0x30] sm:$0xff] }
   0x9   :  { %v903_v19 = vld [vmem:[%s1307_s2 + $0x18] sm:$0xff]  ;;  %v902_v21 = vld [vmem:[%s1307_s2 + $0x10] sm:$0xff]  ;;  %v901_v22 = vld [vmem:[%s1307_s2 + $0x8] sm:$0xff] }
   0xa   :  { %965 = vmatpush.bf16.msra.mxu3 %v897_v2  ;;  %204 = vmatpush.bf16.msra.mxu0 %v897_v2  ;;  %v891_v20 = vld [vmem:[%s1305_s0 + $0x38] sm:$0xff]  ;;  %v900_v23 = vld [vmem:[%s1307_s2] sm:$0xff]  ;;  %v914_v43 = vld [vmem:[%s1309_s4 + $0x30] sm:$0xff] }
   0xb   :  { %v915_v42 = vld [vmem:[%s1309_s4 + $0x38] sm:$0xff]  ;;  %v913_v45 = vld [vmem:[%s1309_s4 + $0x28] sm:$0xff]  ;;  %v912_v46 = vld [vmem:[%s1309_s4 + $0x20] sm:$0xff] }
   0xc   :  { %972 = vmatpush.bf16.msra.mxu1 %v906_v15  ;;  %979 = vmatpush.bf16.msra.mxu2 %v915_v42  ;;  %v911_v50 = vld [vmem:[%s1309_s4 + $0x18] sm:$0xff]  ;;  %v315_v54 = vld [vmem:[%s1313_s8 + $0x68] sm:$0xff]  ;;  %v910_v55 = vld [vmem:[%s1309_s4 + $0x10] sm:$0xff] }
   0xd   :  { %651 = vperm.xlu1 %992, %v315_v54   ;;  %v909_v56 = vld [vmem:[%s1309_s4 + $0x8] sm:$0xff]  ;;  %v317_v57 = vld [vmem:[%s1313_s8 + $0x78] sm:$0xff]  ;;  %v314_v58 = vld [vmem:[%s1313_s8 + $0x60] sm:$0xff] }
   0xe   :  { %966 = vmatpush.bf16.msra.mxu3 %v896_v3  ;;  %205 = vmatpush.bf16.msra.mxu0 %v896_v3  ;;  %v908_v59 = vld [vmem:[%s1309_s4] sm:$0xff]  ;;  %v316_v60 = vld [vmem:[%s1313_s8 + $0x70] sm:$0xff]  ;;  %v311_v62 = vld [vmem:[%s1313_s8 + $0x48] sm:$0xff] }
   0xf   :  { %661 = vperm.xlu0 %991, %v317_v57   ;;  %v310_v61 = vld [vmem:[%s1313_s8 + $0x40] sm:$0xff]  ;;  %v307_v63 = vld [vmem:[%s1313_s8 + $0x28] sm:$0xff]  ;;  %v308_v1 = vld [vmem:[%s1313_s8 + $0x30] sm:$0xff] }
  0x10   :  { %973 = vmatpush.bf16.msra.mxu1 %v905_v16  ;;  %980 = vmatpush.bf16.msra.mxu2 %v914_v43  ;;  %v304_v2 = vld [vmem:[%s1313_s8 + $0x10] sm:$0xff]  ;;  %v1212_v3 = vld [vmem:[%s1308_s3] ss:$0 sm:$0xff] }
  0x12   :  { %967 = vmatpush.bf16.msra.mxu3 %v895_v4  ;;  %206 = vmatpush.bf16.msra.mxu0 %v895_v4 }
  0x14   :  { %974 = vmatpush.bf16.msra.mxu1 %v904_v17  ;;  %981 = vmatpush.bf16.msra.mxu2 %v913_v45 }
  0x15   :  { %646 = vperm.xlu1 %992, %v314_v58  }
  0x16   :  { %968 = vmatpush.bf16.msra.mxu3 %v894_v5  ;;  %207 = vmatpush.bf16.msra.mxu0 %v894_v5 }
  0x17   :  { %656 = vperm.xlu0 %991, %v316_v60  }
  0x18   :  { %975 = vmatpush.bf16.msra.mxu1 %v903_v19  ;;  %982 = vmatpush.bf16.msra.mxu2 %v912_v46 }
  0x1a   :  { %969 = vmatpush.bf16.msra.mxu3 %v893_v6  ;;  %208 = vmatpush.bf16.msra.mxu0 %v893_v6 }
  0x1c   :  { %976 = vmatpush.bf16.msra.mxu1 %v902_v21  ;;  %983 = vmatpush.bf16.msra.mxu2 %v911_v50 }
  0x1d   :  { %626 = vperm.xlu1 %992, %v310_v61  }
  0x1e   :  { %970 = vmatpush.bf16.msra.mxu3 %v892_v7  ;;  %209 = vmatpush.bf16.msra.mxu0 %v892_v7  ;;  %v305_v7 = vld [vmem:[%s1313_s8 + $0x18] sm:$0xff] }
  0x1f   :  { %631 = vperm.xlu0 %991, %v311_v62  }
  0x20   :  { %977 = vmatpush.bf16.msra.mxu1 %v901_v22  ;;  %984 = vmatpush.bf16.msra.mxu2 %v910_v55 }
  0x21   :  { %215 = vmatmul.bf16.vlgmr.msra.gmra.mxu3 %v885_v8  ;;  %210 = vmatmul.bf16.vlgmr.msra.gmra.mxu0 %v884_v13 }
  0x22   :  { %394 = vmatpush.bf16.msrb.mxu0 %v907_v14 }
  0x24   :  { %978 = vmatpush.bf16.msra.mxu1 %v900_v23  ;;  %985 = vmatpush.bf16.msra.mxu2 %v909_v56 }
  0x25   :  { %611 = vperm.xlu1 %992, %v307_v63  }
  0x26   :  { %395 = vmatpush.bf16.msrb.mxu0 %v906_v15 }
  0x27   :  { %616 = vperm.xlu0 %991, %v308_v1  }
  0x28   :  { %986 = vmatpush.bf16.msra.mxu2 %v908_v59 }
  0x2a   :  { %396 = vmatpush.bf16.msrb.mxu0 %v905_v16  ;;  %v312_v16 = vld [vmem:[%s1313_s8 + $0x50] sm:$0xff] }
  0x2d   :  { %596 = vperm.xlu1 %992, %v304_v2  }
  0x2e   :  { %397 = vmatpush.bf16.msrb.mxu0 %v904_v17 }
  0x2f   :  { %601 = vperm.xlu0 %991, %v305_v7  }
  0x31   :  { %220 = vmatmul.bf16.gmra.mxu3 %v886_v9 }
  0x32   :  { %398 = vmatpush.bf16.msrb.mxu0 %v903_v19 }
  0x36   :  { %399 = vmatpush.bf16.msrb.mxu0 %v902_v21  ;;  %v309_v21 = vld [vmem:[%s1313_s8 + $0x38] sm:$0xff] }
  0x3a   :  { %400 = vmatpush.bf16.msrb.mxu0 %v901_v22 }
  0x3e   :  { %401 = vmatpush.bf16.msrb.mxu0 %v900_v23 }
  0x41   :  { %225 = vmatmul.bf16.gmra.mxu3 %v887_v10 }
  0x42   :  { %535 = vmatpush.bf16.msra.mxu0 %v915_v42 }
  0x46   :  { %536 = vmatpush.bf16.msra.mxu0 %v914_v43 }
  0x4a   :  { %537 = vmatpush.bf16.msra.mxu0 %v913_v45 }
  0x4e   :  { %538 = vmatpush.bf16.msra.mxu0 %v912_v46 }
  0x51   :  { %230 = vmatmul.bf16.gmra.mxu3 %v888_v11 }
  0x52   :  { %539 = vmatpush.bf16.msra.mxu0 %v911_v50  ;;  %v302_v50 = vld [vmem:[%s1313_s8] sm:$0xff] }
  0x53   :  { %586 = vperm.xlu0 %991, %v302_v50  }
  0x56   :  { %540 = vmatpush.bf16.msra.mxu0 %v910_v55 }
  0x5a   :  { %541 = vmatpush.bf16.msra.mxu0 %v909_v56 }
  0x5e   :  { %542 = vmatpush.bf16.msra.mxu0 %v908_v59 }
  0x61   :  { %235 = vmatmul.bf16.gmra.mxu3 %v889_v12  ;;  %v313_v12 = vld [vmem:[%s1313_s8 + $0x58] sm:$0xff] }
  0x62   :  { %641 = vperm.xlu2 %993, %v313_v12   ;;  %v1262_v12 = vld [vmem:[%s1310_s5] ss:$0 sm:$0xff]  ;;  %s1023_s5 = smov [#allocation3]  }
  0x6a   :  { %636 = vperm.xlu2 %993, %v312_v16  }
  0x71   :  { %240 = vmatmul.bf16.gmra.mxu3 %v890_v18 }
  0x72   :  { %621 = vperm.xlu2 %993, %v309_v21  }
  0x7f   :  { %v1248_v1 = vpop.permute.xlu1 %651 }
  0x81   :  { %245 = vmatmul.bf16.gmra.mxu3 %v891_v20  ;;  %v1250_v2 = vpop.permute.xlu0 %661 }
  0x9e   :  { %v211_v36 = vpop.f32.mrf.mxu0 }
  0xa4   :  { %v216_v24 = vpop.f32.mrf.mxu3 }
  0xa6   :  { %v213_v38 = vpop.f32.mrf.mxu0 }
  0xa7   :  { %v318_v39 = vpack.c.bf16 %v213_v38, %v211_v36 }
  0xa9   :  { %402 = vmatmul.bf16.vlgmr.msrb.gmra.mxu0 %v318_v39 }
  0xac   :  { %v218_v25 = vpop.f32.mrf.mxu3 }
  0xad   :  { %v319_v26 = vpack.c.bf16 %v218_v25, %v216_v24  ;;  %v306_v25 = vld [vmem:[%s1313_s8 + $0x20] sm:$0xff] }
  0xae   :  { %606 = vperm.xlu2 %993, %v306_v25  }
  0xaf   :  { %407 = vmatmul.bf16.vlgmr.msra.gmra.mxu1 %v319_v26 }
  0xb4   :  { %v221_v27 = vpop.f32.mrf.mxu3 }
  0xbc   :  { %v223_v28 = vpop.f32.mrf.mxu3 }
  0xbd   :  { %v320_v29 = vpack.c.bf16 %v223_v28, %v221_v27 }
  0xbf   :  { %412 = vmatmul.bf16.gmra.mxu1 %v320_v29 }
  0xc4   :  { %v226_v30 = vpop.f32.mrf.mxu3 }
  0xcc   :  { %v228_v31 = vpop.f32.mrf.mxu3 }
  0xcd   :  { %v321_v32 = vpack.c.bf16 %v228_v31, %v226_v30 }
  0xcf   :  { %417 = vmatmul.bf16.gmra.mxu1 %v321_v32 }
  0xd4   :  { %v231_v33 = vpop.f32.mrf.mxu3 }
  0xdc   :  { %v233_v34 = vpop.f32.mrf.mxu3 }
  0xdd   :  { %v322_v35 = vpack.c.bf16 %v233_v34, %v231_v33 }
  0xdf   :  { %422 = vmatmul.bf16.gmra.mxu1 %v322_v35 }
  0xe4   :  { %v236_v37 = vpop.f32.mrf.mxu3 }
  0xec   :  { %v238_v40 = vpop.f32.mrf.mxu3 }
  0xed   :  { %v323_v41 = vpack.c.bf16 %v238_v40, %v236_v37 }
  0xef   :  { %427 = vmatmul.bf16.gmra.mxu1 %v323_v41 }
  0xf4   :  { %v241_v44 = vpop.f32.mrf.mxu3 }
  0xfc   :  { %v243_v47 = vpop.f32.mrf.mxu3 }
  0xfd   :  { %v324_v48 = vpack.c.bf16 %v243_v47, %v241_v44 }
  0xff   :  { %432 = vmatmul.bf16.gmra.mxu1 %v324_v48 }
 0x104   :  { %v246_v49 = vpop.f32.mrf.mxu3 }
 0x10c   :  { %v248_v51 = vpop.f32.mrf.mxu3 }
 0x10d   :  { %v325_v52 = vpack.c.bf16 %v248_v51, %v246_v49 }
 0x10f   :  { %437 = vmatmul.bf16.gmra.mxu1 %v325_v52 }
 0x126   :  { %v403_v35 = vpop.f32.mrf.mxu0 }
 0x127   :  { %v404_v38 = vadd.f32 %v1212_v3, %v403_v35 }
 0x129   :  { %v443_v40 = vmax.f32 %v404_v38, 0.0 }
 0x12c   :  { %v408_v0 = vpop.f32.mrf.mxu1 }
 0x12d   :  { %v409_v4 = vadd.f32 %v1212_v3, %v408_v0 }
 0x12e   :  { %v405_v39 = vpop.f32.mrf.mxu0 }
 0x12f   :  { %v445_v8 = vmax.f32 %v409_v4, 0.0  ;;  %v406_v41 = vadd.f32 %v1212_v3, %v405_v39  ;;  %v303_v4 = vld [vmem:[%s1313_s8 + $0x8] sm:$0xff]  ;;  %s738_s8 = sshll.u32 %s1023_s5, 4  ;;  %s739_s8 = int_to_ptr.vmem [resolvable:$true] %s738_s8 }
 0x130   :  { %591 = vperm.xlu2 %993, %v303_v4  }
 0x131   :  { %v444_v43 = vmax.f32 %v406_v41, 0.0 }
 0x133   :  { %v459_v46 = vpack.c.bf16 %v444_v43, %v443_v40 }
 0x134   :  { %v410_v5 = vpop.f32.mrf.mxu1 }
 0x135   :  { %v411_v6 = vadd.f32 %v1212_v3, %v410_v5  ;;  %543 = vmatmul.bf16.vlgmr.msra.gmra.mxu0 %v459_v46  ;;  %v1255_v5 = vpop.permute.xlu1 %646 }
 0x137   :  { %v446_v9 = vmax.f32 %v411_v6, 0.0  ;;  %v1257_v6 = vpop.permute.xlu0 %656 }
 0x139   :  { %v460_v10 = vpack.c.bf16 %v446_v9, %v445_v8 }
 0x13b   :  { %548 = vmatmul.bf16.vlgmr.msra.gmra.mxu2 %v460_v10 }
 0x13c   :  { %v413_v11 = vpop.f32.mrf.mxu1 }
 0x13d   :  { %v414_v13 = vadd.f32 %v1212_v3, %v413_v11  ;;  %v627_v7 = vpop.permute.xlu1 %626 }
 0x13f   :  { %v447_v17 = vmax.f32 %v414_v13, 0.0  ;;  %v632_v8 = vpop.permute.xlu0 %631 }
 0x144   :  { %v415_v14 = vpop.f32.mrf.mxu1 }
 0x145   :  { %v416_v15 = vadd.f32 %v1212_v3, %v415_v14  ;;  %v612_v9 = vpop.permute.xlu1 %611 }
 0x147   :  { %v448_v18 = vmax.f32 %v416_v15, 0.0  ;;  %v617_v10 = vpop.permute.xlu0 %616 }
 0x149   :  { %v461_v19 = vpack.c.bf16 %v448_v18, %v447_v17 }
 0x14b   :  { %553 = vmatmul.bf16.gmra.mxu2 %v461_v19 }
 0x14c   :  { %v418_v20 = vpop.f32.mrf.mxu1 }
 0x14d   :  { %v419_v22 = vadd.f32 %v1212_v3, %v418_v20  ;;  %v597_v15 = vpop.permute.xlu1 %596 }
 0x14f   :  { %v449_v26 = vmax.f32 %v419_v22, 0.0  ;;  %v602_v17 = vpop.permute.xlu0 %601 }
 0x154   :  { %v420_v23 = vpop.f32.mrf.mxu1 }
 0x155   :  { %v421_v24 = vadd.f32 %v1212_v3, %v420_v23 }
 0x157   :  { %v450_v27 = vmax.f32 %v421_v24, 0.0  ;;  %v587_v50 = vpop.permute.xlu0 %586 }
 0x159   :  { %v462_v28 = vpack.c.bf16 %v450_v27, %v449_v26 }
 0x15b   :  { %558 = vmatmul.bf16.gmra.mxu2 %v462_v28 }
 0x15c   :  { %v423_v29 = vpop.f32.mrf.mxu1 }
 0x15d   :  { %v424_v30 = vadd.f32 %v1212_v3, %v423_v29 }
 0x15f   :  { %v451_v33 = vmax.f32 %v424_v30, 0.0 }
 0x164   :  { %v425_v31 = vpop.f32.mrf.mxu1 }
 0x165   :  { %v426_v32 = vadd.f32 %v1212_v3, %v425_v31 }
 0x167   :  { %v452_v34 = vmax.f32 %v426_v32, 0.0 }
 0x169   :  { %v463_v36 = vpack.c.bf16 %v452_v34, %v451_v33 }
 0x16b   :  { %563 = vmatmul.bf16.gmra.mxu2 %v463_v36 }
 0x16c   :  { %v428_v37 = vpop.f32.mrf.mxu1 }
 0x16d   :  { %v429_v42 = vadd.f32 %v1212_v3, %v428_v37 }
 0x16f   :  { %v453_v47 = vmax.f32 %v429_v42, 0.0 }
 0x174   :  { %v430_v44 = vpop.f32.mrf.mxu1 }
 0x175   :  { %v431_v45 = vadd.f32 %v1212_v3, %v430_v44 }
 0x177   :  { %v454_v48 = vmax.f32 %v431_v45, 0.0 }
 0x179   :  { %v464_v49 = vpack.c.bf16 %v454_v48, %v453_v47 }
 0x17b   :  { %568 = vmatmul.bf16.gmra.mxu2 %v464_v49 }
 0x17c   :  { %v433_v51 = vpop.f32.mrf.mxu1 }
 0x17d   :  { %v434_v52 = vadd.f32 %v1212_v3, %v433_v51 }
 0x17f   :  { %v455_v55 = vmax.f32 %v434_v52, 0.0 }
 0x184   :  { %v435_v53 = vpop.f32.mrf.mxu1 }
 0x185   :  { %v436_v54 = vadd.f32 %v1212_v3, %v435_v53 }
 0x187   :  { %v456_v56 = vmax.f32 %v436_v54, 0.0 }
 0x189   :  { %v465_v57 = vpack.c.bf16 %v456_v56, %v455_v55 }
 0x18b   :  { %573 = vmatmul.bf16.gmra.mxu2 %v465_v57 }
 0x18c   :  { %v438_v58 = vpop.f32.mrf.mxu1 }
 0x18d   :  { %v439_v59 = vadd.f32 %v1212_v3, %v438_v58 }
 0x18f   :  { %v457_v62 = vmax.f32 %v439_v59, 0.0 }
 0x194   :  { %v440_v60 = vpop.f32.mrf.mxu1 }
 0x195   :  { %v441_v61 = vadd.f32 %v1212_v3, %v440_v60  ;;  %v642_v3 = vpop.permute.xlu2 %641 }
 0x197   :  { %v458_v63 = vmax.f32 %v441_v61, 0.0 }
 0x199   :  { %v466_v0 = vpack.c.bf16 %v458_v63, %v457_v62 }
 0x19b   :  { %578 = vmatmul.bf16.gmra.mxu2 %v466_v0 }
 0x19d   :  { %v637_v13 = vpop.permute.xlu2 %636 }
 0x1a5   :  { %v622_v22 = vpop.permute.xlu2 %621 }
 0x1ad   :  { %v607_v25 = vpop.permute.xlu2 %606 }
 0x1b2   :  { %v544_v39 = vpop.f32.mrf.mxu0 }
 0x1b3   :  { %v545_v45 = vadd.f32 %v1262_v12, %v544_v39 }
 0x1b5   :  { %v592_v49 = vpop.permute.xlu2 %591  ;;  %v664_v52 = vmul.f32 %v587_v50, %v545_v45 }
 0x1ba   :  { %v546_v47 = vpop.f32.mrf.mxu0 }
 0x1bb   :  { %v547_v48 = vadd.f32 %v1262_v12, %v546_v47 }
 0x1bd   :  { %v665_v53 = vmul.f32 %v592_v49, %v547_v48 }
 0x1be   :  { %v549_v11 = vpop.f32.mrf.mxu2 }
 0x1bf   :  { %v550_v14 = vadd.f32 %v1262_v12, %v549_v11  ;;  %v919_v54 = vpack.c.bf16 %v665_v53, %v664_v52 }
 0x1c1   :  { %v1266_v19 = vmul.f32 %v597_v15, %v550_v14  ;;  %920 = vst [vmem:[#allocation3] sm:$0xff] %v919_v54  }
 0x1c6   :  { %v551_v16 = vpop.f32.mrf.mxu2 }
 0x1c7   :  { %v552_v18 = vadd.f32 %v1262_v12, %v551_v16 }
 0x1c9   :  { %v1268_v20 = vmul.f32 %v602_v17, %v552_v18 }
 0x1cb   :  { %v924_v21 = vpack.c.bf16 %v1268_v20, %v1266_v19 }
 0x1cd   :  { %956 = vst [vmem:[#allocation3 + $0x8] sm:$0xff] %v924_v21  }
 0x1ce   :  { %v554_v23 = vpop.f32.mrf.mxu2 }
 0x1cf   :  { %v555_v24 = vadd.f32 %v1262_v12, %v554_v23 }
 0x1d1   :  { %v1274_v28 = vmul.f32 %v607_v25, %v555_v24 }
 0x1d6   :  { %v556_v26 = vpop.f32.mrf.mxu2 }
 0x1d7   :  { %v557_v27 = vadd.f32 %v1262_v12, %v556_v26 }
 0x1d9   :  { %v669_v29 = vmul.f32 %v612_v9, %v557_v27 }
 0x1db   :  { %v929_v30 = vpack.c.bf16 %v669_v29, %v1274_v28 }
 0x1dd   :  { %957 = vst [vmem:[#allocation3 + $0x10] sm:$0xff] %v929_v30  }
 0x1de   :  { %v559_v31 = vpop.f32.mrf.mxu2 }
 0x1df   :  { %v560_v32 = vadd.f32 %v1262_v12, %v559_v31 }
 0x1e1   :  { %v670_v35 = vmul.f32 %v617_v10, %v560_v32 }
 0x1e6   :  { %v561_v33 = vpop.f32.mrf.mxu2 }
 0x1e7   :  { %v562_v34 = vadd.f32 %v1262_v12, %v561_v33 }
 0x1e9   :  { %v671_v36 = vmul.f32 %v622_v22, %v562_v34 }
 0x1eb   :  { %v934_v37 = vpack.c.bf16 %v671_v36, %v670_v35 }
 0x1ed   :  { %958 = vst [vmem:[#allocation3 + $0x18] sm:$0xff] %v934_v37  }
 0x1ee   :  { %v564_v38 = vpop.f32.mrf.mxu2 }
 0x1ef   :  { %v565_v40 = vadd.f32 %v1262_v12, %v564_v38 }
 0x1f1   :  { %v672_v43 = vmul.f32 %v627_v7, %v565_v40 }
 0x1f6   :  { %v566_v41 = vpop.f32.mrf.mxu2 }
 0x1f7   :  { %v567_v42 = vadd.f32 %v1262_v12, %v566_v41 }
 0x1f9   :  { %v673_v44 = vmul.f32 %v632_v8, %v567_v42 }
 0x1fb   :  { %v939_v46 = vpack.c.bf16 %v673_v44, %v672_v43 }
 0x1fd   :  { %959 = vst [vmem:[#allocation3 + $0x20] sm:$0xff] %v939_v46  }
 0x1fe   :  { %v569_v51 = vpop.f32.mrf.mxu2 }
 0x1ff   :  { %v570_v55 = vadd.f32 %v1262_v12, %v569_v51 }
 0x201   :  { %v674_v58 = vmul.f32 %v637_v13, %v570_v55 }
 0x206   :  { %v571_v56 = vpop.f32.mrf.mxu2 }
 0x207   :  { %v572_v57 = vadd.f32 %v1262_v12, %v571_v56 }
 0x209   :  { %v675_v59 = vmul.f32 %v642_v3, %v572_v57 }
 0x20b   :  { %v944_v60 = vpack.c.bf16 %v675_v59, %v674_v58 }
 0x20d   :  { %960 = vst [vmem:[#allocation3 + $0x28] sm:$0xff] %v944_v60  }
 0x20e   :  { %v574_v61 = vpop.f32.mrf.mxu2 }
 0x20f   :  { %v575_v62 = vadd.f32 %v1262_v12, %v574_v61 }
 0x211   :  { %v676_v4 = vmul.f32 %v1255_v5, %v575_v62 }
 0x216   :  { %v576_v63 = vpop.f32.mrf.mxu2 }
 0x217   :  { %v577_v0 = vadd.f32 %v1262_v12, %v576_v63 }
 0x219   :  { %v677_v7 = vmul.f32 %v1248_v1, %v577_v0  ;;  %v712_v1 = vld [vmem:[%s1314_s9] sm:$0x3] }
 0x21b   :  { %v949_v8 = vpack.c.bf16 %v677_v7, %v676_v4 }
 0x21d   :  { %961 = vst [vmem:[#allocation3 + $0x30] sm:$0xff] %v949_v8  }
 0x21e   :  { %v579_v9 = vpop.f32.mrf.mxu2 }
 0x21f   :  { %v580_v10 = vadd.f32 %v1262_v12, %v579_v9 }
 0x221   :  { %v678_v13 = vmul.f32 %v1257_v6, %v580_v10 }
 0x226   :  { %v581_v11 = vpop.f32.mrf.mxu2 }
 0x227   :  { %v582_v3 = vadd.f32 %v1262_v12, %v581_v11 }
 0x229   :  { %v679_v14 = vmul.f32 %v1250_v2, %v582_v3 }
 0x22b   :  { %v954_v15 = vpack.c.bf16 %v679_v14, %v678_v13  ;;  %713 = vmatpush.msrb.mxu0 %v679_v14 }
 0x22d   :  { %962 = vst [vmem:[#allocation3 + $0x38] sm:$0xff] %v954_v15   ;;  %714 = vmatpush.msrb.mxu0 %v678_v13 }
 0x22e   :  { %746 = dma.vmem_to_hbm [thread:$0]  %s739_s8, 1024, %s741_s21, [#allocation4], %s1024_s23, %s1024_s23, %s1025_s24  }
 0x22f   :  { %715 = vmatpush.msrb.mxu0 %v677_v7 }
 0x231   :  { %716 = vmatpush.msrb.mxu0 %v676_v4 }
 0x233   :  { %717 = vmatpush.msrb.mxu0 %v675_v59 }
 0x235   :  { %718 = vmatpush.msrb.mxu0 %v674_v58 }
 0x237   :  { %719 = vmatpush.msrb.mxu0 %v673_v44 }
 0x239   :  { %720 = vmatpush.msrb.mxu0 %v672_v43 }
 0x23b   :  { %721 = vmatpush.msrb.mxu0 %v671_v36 }
 0x23d   :  { %722 = vmatpush.msrb.mxu0 %v670_v35 }
 0x23f   :  { %723 = vmatpush.msrb.mxu0 %v669_v29 }
 0x241   :  { %724 = vmatpush.msrb.mxu0 %v1274_v28 }
 0x243   :  { %725 = vmatpush.msrb.mxu0 %v1268_v20 }
 0x245   :  { %726 = vmatpush.msrb.mxu0 %v1266_v19 }
 0x247   :  { %727 = vmatpush.msrb.mxu0 %v665_v53 }
 0x249   :  { %728 = vmatpush.msrb.mxu0 %v664_v52 }
 0x24a   :  { %729 = vmatmul.f32.vlgmr.msrb.gmra.mxu0 %v712_v1 }
 0x2c7   :  { %v730_v2 = vpop.f32.mrf.mxu0 }
 0x2c8   :  { %733 = vst [vmem:[%s1316_s11] sm:$0x3] %v730_v2 }
 0x2c9   :  { %1020 = dma.done.wait [#allocation4], 1024  }
 0x2ca   :  { %1021 = vsyncadd [#allocation4], 4294966272 }
 0x2cb   :  { %755 = vsyncpa [#allocation4], 1 }

// kernel: net_forward.11
= control target key start
LH: loop header
LB: loop body
LE: loop exit
PB: predicated region body
PF: predicated region fallthrough
CT: control target
= control target key end

     0   :  { %s979_s0 = inlined_call_operand.vmem [shape: bf16[2,640], index: 0, kind: input, shape index: {}]   ;;  %s980_s1 = inlined_call_operand.vmem [shape: bf16[640,128], index: 1, kind: input, shape index: {}]   ;;  %s981_s2 = inlined_call_operand.vmem [shape: f32[1,128], index: 2, kind: input, shape index: {}]   ;;  %s982_s3 = inlined_call_operand.vmem [shape: bf16[128,128], index: 3, kind: input, shape index: {}]   ;;  %s983_s4 = inlined_call_operand.vmem [shape: f32[1,128], index: 4, kind: input, shape index: {}]   ;;  %s984_s5 = inlined_call_operand.hbm [shape: f32[2,128], index: 5, kind: output, shape index: {}]  }
   0x1   :  { %v722_v0 = vld [vmem:[%s980_s1 + $0x38] sm:$0xff]  ;;  %v721_v3 = vld [vmem:[%s980_s1 + $0x30] sm:$0xff]  ;;  %v720_v8 = vld [vmem:[%s980_s1 + $0x28] sm:$0xff] }
   0x2   :  { %v738_v1 = vld [vmem:[%s980_s1 + $0xb8] sm:$0xff]  ;;  %358 = vmatpush.bf16.msra.mxu0 %v722_v0  ;;  %v737_v5 = vld [vmem:[%s980_s1 + $0xb0] sm:$0xff]  ;;  %v736_v9 = vld [vmem:[%s980_s1 + $0xa8] sm:$0xff] }
   0x3   :  { %v746_v2 = vld [vmem:[%s980_s1 + $0xf8] sm:$0xff]  ;;  %384 = vmatpush.bf16.msra.mxu2 %v738_v1  ;;  %v745_v6 = vld [vmem:[%s980_s1 + $0xf0] sm:$0xff]  ;;  %v744_v10 = vld [vmem:[%s980_s1 + $0xe8] sm:$0xff] }
   0x4   :  { %v730_v4 = vld [vmem:[%s980_s1 + $0x78] sm:$0xff]  ;;  %397 = vmatpush.bf16.msra.mxu3 %v746_v2  ;;  %v729_v7 = vld [vmem:[%s980_s1 + $0x70] sm:$0xff]  ;;  %v728_v11 = vld [vmem:[%s980_s1 + $0x68] sm:$0xff] }
   0x5   :  { %371 = vmatpush.bf16.msra.mxu1 %v730_v4  ;;  %v21_v12 = vld [vmem:[%s979_s0] sm:$0x1f] }
   0x6   :  { %359 = vmatpush.bf16.msra.mxu0 %v721_v3  ;;  %v719_v13 = vld [vmem:[%s980_s1 + $0x20] sm:$0xff]  ;;  %107 = vst [vmem:[#allocation1] ss:$9 sm:$0xff] %v21_v12 }
   0x7   :  { %385 = vmatpush.bf16.msra.mxu2 %v737_v5  ;;  %v735_v14 = vld [vmem:[%s980_s1 + $0xa0] sm:$0xff] }
   0x8   :  { %398 = vmatpush.bf16.msra.mxu3 %v745_v6  ;;  %v743_v15 = vld [vmem:[%s980_s1 + $0xe0] sm:$0xff] }
   0x9   :  { %372 = vmatpush.bf16.msra.mxu1 %v729_v7  ;;  %v727_v16 = vld [vmem:[%s980_s1 + $0x60] sm:$0xff] }
   0xa   :  { %360 = vmatpush.bf16.msra.mxu0 %v720_v8 }
   0xb   :  { %386 = vmatpush.bf16.msra.mxu2 %v736_v9 }
   0xc   :  { %399 = vmatpush.bf16.msra.mxu3 %v744_v10 }
   0xd   :  { %373 = vmatpush.bf16.msra.mxu1 %v728_v11 }
   0xe   :  { %10 = vsyncpa [#allocation3], 0  ;;  %361 = vmatpush.bf16.msra.mxu0 %v719_v13  ;;  %v718_v17 = vld [vmem:[%s980_s1 + $0x18] sm:$0xff]  ;;  %v717_v21 = vld [vmem:[%s980_s1 + $0x10] sm:$0xff]  ;;  %s792_s15 = smov [#allocation2]   ;;  %s514_s18 = sshll.u32 %s984_s5, 4  ;;  %s515_s18 = int_to_ptr.hbm [resolvable:$true] %s514_s18 }
   0xf   :  { %387 = vmatpush.bf16.msra.mxu2 %v735_v14  ;;  %v734_v18 = vld [vmem:[%s980_s1 + $0x98] sm:$0xff]  ;;  %v733_v22 = vld [vmem:[%s980_s1 + $0x90] sm:$0xff]  ;;  %v716_v25 = vld [vmem:[%s980_s1 + $0x8] sm:$0xff]  ;;  %s512_s16 = sshll.u32 %s792_s15, 4  ;;  %s513_s16 = int_to_ptr.vmem [resolvable:$true] %s512_s16 }
  0x10   :  { %400 = vmatpush.bf16.msra.mxu3 %v743_v15  ;;  %v742_v19 = vld [vmem:[%s980_s1 + $0xd8] sm:$0xff]  ;;  %v741_v23 = vld [vmem:[%s980_s1 + $0xd0] sm:$0xff]  ;;  %v732_v26 = vld [vmem:[%s980_s1 + $0x88] sm:$0xff] }
  0x11   :  { %374 = vmatpush.bf16.msra.mxu1 %v727_v16  ;;  %v726_v20 = vld [vmem:[%s980_s1 + $0x58] sm:$0xff]  ;;  %v725_v24 = vld [vmem:[%s980_s1 + $0x50] sm:$0xff]  ;;  %v740_v27 = vld [vmem:[%s980_s1 + $0xc8] sm:$0xff] }
  0x12   :  { %362 = vmatpush.bf16.msra.mxu0 %v718_v17  ;;  %v724_v28 = vld [vmem:[%s980_s1 + $0x48] sm:$0xff]  ;;  %v715_v29 = vld [vmem:[%s980_s1] sm:$0xff]  ;;  %v754_v30 = vld [vmem:[%s980_s1 + $0x138] sm:$0xff] }
  0x13   :  { %388 = vmatpush.bf16.msra.mxu2 %v734_v18  ;;  %v731_v31 = vld [vmem:[%s980_s1 + $0x80] sm:$0xff]  ;;  %v753_v35 = vld [vmem:[%s980_s1 + $0x130] sm:$0xff]  ;;  %v752_v39 = vld [vmem:[%s980_s1 + $0x128] sm:$0xff] }
  0x14   :  { %401 = vmatpush.bf16.msra.mxu3 %v742_v19  ;;  %v739_v32 = vld [vmem:[%s980_s1 + $0xc0] sm:$0xff]  ;;  %v110_v36 = vld [vmem:[#allocation1 + $0x12] sm:$0xff]  ;;  %v109_v38 = vld [vmem:[#allocation1 + $0x9] sm:$0xff] }
  0x15   :  { %375 = vmatpush.bf16.msra.mxu1 %v726_v20  ;;  %v723_v33 = vld [vmem:[%s980_s1 + $0x40] sm:$0xff]  ;;  %v750_v41 = vld [vmem:[%s980_s1 + $0x118] sm:$0xff]  ;;  %v749_v42 = vld [vmem:[%s980_s1 + $0x110] sm:$0xff] }
  0x16   :  { %363 = vmatpush.bf16.msra.mxu0 %v717_v21  ;;  %v108_v34 = vld [vmem:[#allocation1] sm:$0xff]  ;;  %v748_v43 = vld [vmem:[%s980_s1 + $0x108] sm:$0xff]  ;;  %v762_v46 = vld [vmem:[%s982_s3 + $0x38] sm:$0xff] }
  0x17   :  { %389 = vmatpush.bf16.msra.mxu2 %v733_v22  ;;  %v111_v37 = vld [vmem:[#allocation1 + $0x1b] sm:$0xff]  ;;  %v112_v45 = vld [vmem:[#allocation1 + $0x24] sm:$0xff]  ;;  %v761_v47 = vld [vmem:[%s982_s3 + $0x30] sm:$0xff] }
  0x18   :  { %402 = vmatpush.bf16.msra.mxu3 %v741_v23  ;;  %v751_v40 = vld [vmem:[%s980_s1 + $0x120] sm:$0xff]  ;;  %v760_v48 = vld [vmem:[%s982_s3 + $0x28] sm:$0xff]  ;;  %v758_v50 = vld [vmem:[%s982_s3 + $0x18] sm:$0xff] }
  0x19   :  { %376 = vmatpush.bf16.msra.mxu1 %v725_v24  ;;  %v747_v44 = vld [vmem:[%s980_s1 + $0x100] sm:$0xff]  ;;  %v757_v51 = vld [vmem:[%s982_s3 + $0x10] sm:$0xff]  ;;  %v756_v52 = vld [vmem:[%s982_s3 + $0x8] sm:$0xff] }
  0x1a   :  { %364 = vmatpush.bf16.msra.mxu0 %v716_v25  ;;  %v759_v49 = vld [vmem:[%s982_s3 + $0x20] sm:$0xff] }
  0x1b   :  { %390 = vmatpush.bf16.msra.mxu2 %v732_v26  ;;  %v755_v53 = vld [vmem:[%s982_s3] sm:$0xff] }
  0x1c   :  { %403 = vmatpush.bf16.msra.mxu3 %v740_v27  ;;  %v764_v60 = vld [vmem:[%s981_s2] ss:$0 sm:$0xff] }
  0x1d   :  { %377 = vmatpush.bf16.msra.mxu1 %v724_v28  ;;  %v765_v8 = vld [vmem:[%s983_s4] ss:$0 sm:$0xff] }
  0x1e   :  { %365 = vmatpush.bf16.msra.mxu0 %v715_v29 }
  0x1f   :  { %391 = vmatpush.bf16.msra.mxu2 %v731_v31 }
  0x20   :  { %404 = vmatpush.bf16.msra.mxu3 %v739_v32 }
  0x21   :  { %378 = vmatpush.bf16.msra.mxu1 %v723_v33  ;;  %366 = vmatmul.bf16.vlgmr.msra.gmra.mxu0 %v108_v34 }
  0x22   :  { %410 = vmatpush.bf16.msrb.mxu0 %v754_v30  ;;  %392 = vmatmul.bf16.vlgmr.msra.gmra.mxu2 %v110_v36 }
  0x23   :  { %405 = vmatmul.bf16.vlgmr.msra.gmra.mxu3 %v111_v37 }
  0x24   :  { %379 = vmatmul.bf16.vlgmr.msra.gmra.mxu1 %v109_v38 }
  0x25   :  { %493 = vmatpush.bf16.msrb.mxu1 %v762_v46 }
  0x26   :  { %411 = vmatpush.bf16.msrb.mxu0 %v753_v35 }
  0x29   :  { %494 = vmatpush.bf16.msrb.mxu1 %v761_v47 }
  0x2a   :  { %412 = vmatpush.bf16.msrb.mxu0 %v752_v39 }
  0x2d   :  { %495 = vmatpush.bf16.msrb.mxu1 %v760_v48 }
  0x2e   :  { %413 = vmatpush.bf16.msrb.mxu0 %v751_v40 }
  0x31   :  { %496 = vmatpush.bf16.msrb.mxu1 %v759_v49 }
  0x32   :  { %414 = vmatpush.bf16.msrb.mxu0 %v750_v41 }
  0x35   :  { %497 = vmatpush.bf16.msrb.mxu1 %v758_v50 }
  0x36   :  { %415 = vmatpush.bf16.msrb.mxu0 %v749_v42 }
  0x39   :  { %498 = vmatpush.bf16.msrb.mxu1 %v757_v51 }
  0x3a   :  { %416 = vmatpush.bf16.msrb.mxu0 %v748_v43 }
  0x3d   :  { %499 = vmatpush.bf16.msrb.mxu1 %v756_v52 }
  0x3e   :  { %417 = vmatpush.bf16.msrb.mxu0 %v747_v44 }
  0x41   :  { %418 = vmatmul.bf16.vlgmr.msrb.gmra.mxu0 %v112_v45  ;;  %500 = vmatpush.bf16.msrb.mxu1 %v755_v53 }
  0x9e   :  { %v367_v54 = vpop.f32.mrf.mxu0 }
  0x9f   :  { %v368_v62 = vadd.f32 %v764_v60, %v367_v54 }
  0xa1   :  { %v380_v55 = vpop.f32.mrf.mxu1 }
  0xa2   :  { %v381_v0 = vadd.f32 %v380_v55, %v368_v62 }
  0xa5   :  { %v393_v56 = vpop.f32.mrf.mxu2 }
  0xa6   :  { %v369_v57 = vpop.f32.mrf.mxu0  ;;  %v406_v58 = vpop.f32.mrf.mxu3  ;;  %v394_v1 = vadd.f32 %v393_v56, %v381_v0 }
  0xa8   :  { %v407_v2 = vadd.f32 %v406_v58, %v394_v1 }
  0xa9   :  { %v382_v59 = vpop.f32.mrf.mxu1 }
  0xad   :  { %v395_v61 = vpop.f32.mrf.mxu2 }
  0xae   :  { %v408_v63 = vpop.f32.mrf.mxu3 }
  0xbe   :  { %v419_v3 = vpop.f32.mrf.mxu0 }
  0xbf   :  { %v420_v4 = vadd.f32 %v419_v3, %v407_v2 }
  0xc1   :  { %v423_v5 = vmax.f32 %v420_v4, 0.0 }
  0xc3   :  { %v424_v6 = vpack.c.bf16 %v423_v5, %v423_v5 }
  0xc5   :  { %501 = vmatmul.bf16.vlgmr.msrb.gmra.mxu1 %v424_v6 }
  0xc6   :  { %v421_v7 = vpop.f32.mrf.mxu0 }
 0x142   :  { %v502_v9 = vpop.f32.mrf.mxu1 }
 0x143   :  { %v503_v10 = vadd.f32 %v765_v8, %v502_v9 }
 0x145   :  { %506 = vst [vmem:[#allocation2] sm:$0x3] %v503_v10 }
 0x146   :  { %517 = dma.vmem_to_hbm [thread:$0]  %s513_s16, 32, %s515_s18, [#allocation3]  }
 0x14a   :  { %v504_v11 = vpop.f32.mrf.mxu1 }
 0x14b   :  { %790 = dma.done.wait [#allocation3], 32  }
 0x14c   :  { %791 = vsyncadd [#allocation3], 4294967264 }
 0x14d   :  { %522 = vsyncpa [#allocation3], 1 }

</bundles_post_ra>
